<compile_context>
chip_gen: v5e
topology: v5e:2x2
jax: 0.10.0
libtpu: 0.0.40
codegen_flags: <defaults>
</compile_context>

<pallas_src>
import functools

import jax
import jax.numpy as jnp
from jax.experimental import pallas as pl
from jax.experimental.pallas import tpu as pltpu


# ----------------------------- Pallas kernel -------------------------------

def _fused_conv_norm_act_kernel(x_ref, w_ref, o_ref, *, H, W, eps, slope):
    """(3x3 conv ∘ 1x1 conv) + InstanceNorm2d + LeakyReLU for one image.

    x_ref: (1, Cin, HW)   upsampled image, HW (=H*W) on the lane axis
    w_ref: (9, Oc, Cin)   folded conv weight, tap-major ((kh,kw), out, in)
    o_ref: (1, Oc, HW)    output, HW on the lane axis (lane-dense stores)

    im2col is done in-register: for every 3x3 tap the flat image is rotated
    along the lane axis (pltpu.roll -> XLU) and border-masked, then a small
    (Oc,Cin)x(Cin,HW) MXU matmul is accumulated in f32.
    """
    HW = H * W
    Oc = o_ref.shape[1]

    x = x_ref[0]                                            # (Cin, HW) f32

    # Flat spatial position -> (row, col) for the zero-padding border masks.
    pos = jax.lax.broadcasted_iota(jnp.int32, (1, HW), 1)
    if (W & (W - 1)) == 0:                                  # power-of-two fast path
        log2w = int(W).bit_length() - 1
        row = pos >> log2w
        col = pos & (W - 1)
    else:
        row = pos // W
        col = pos - row * W

    acc = jnp.zeros((Oc, HW), jnp.float32)
    for kh in range(3):
        dh = kh - 1
        if dh < 0:
            row_ok = row >= -dh
        elif dh > 0:
            row_ok = row < (H - dh)
        else:
            row_ok = None
        for kw in range(3):
            dw = kw - 1
            if dw < 0:
                col_ok = col >= -dw
            elif dw > 0:
                col_ok = col < (W - dw)
            else:
                col_ok = None

            # shifted[i] = x[i + dh*W + dw]  (wrapped values are masked to 0)
            shift = dh * W + dw
            if shift == 0:
                tap = x
            else:
                tap = pltpu.roll(x, shift=(-shift) % HW, axis=1)

            if row_ok is None:
                mask = col_ok
            elif col_ok is None:
                mask = row_ok
            else:
                mask = jnp.logical_and(row_ok, col_ok)
            if mask is not None:
                tap = tap * mask.astype(jnp.float32)        # zero the halo

            w_k = w_ref[kh * 3 + kw]                        # (Oc, Cin)
            acc = acc + jnp.dot(w_k, tap, preferred_element_type=jnp.float32)

    # InstanceNorm2d (no affine, biased variance, eps) over HW per channel.
    inv_hw = jnp.float32(1.0 / HW)
    mean = jnp.sum(acc, axis=1, keepdims=True) * inv_hw     # (Oc, 1)
    d = acc - mean
    var = jnp.sum(d * d, axis=1, keepdims=True) * inv_hw    # (Oc, 1)
    z = d * jax.lax.rsqrt(var + eps)

    # LeakyReLU
    o_ref[0] = jnp.where(z > 0, z, slope * z).astype(o_ref.dtype)


# ------------------------------- JAX glue ----------------------------------

def bilinear_upsample_nchw(x, scale):
    """PyTorch nn.Upsample(mode='bilinear', align_corners=False) semantics."""
    n, c, h, w = x.shape
    oh, ow = h * scale, w * scale

    def idx_weights(in_size, out_size):
        i = jnp.arange(out_size, dtype=jnp.float32)
        src = jnp.maximum((i + 0.5) * (in_size / out_size) - 0.5, 0.0)
        i0 = jnp.minimum(jnp.floor(src).astype(jnp.int32), in_size - 1)
        i1 = jnp.minimum(i0 + 1, in_size - 1)
        w1 = src - i0.astype(jnp.float32)
        return i0, i1, 1.0 - w1, w1

    h0, h1, wh0, wh1 = idx_weights(h, oh)
    w0, w1, ww0, ww1 = idx_weights(w, ow)
    xh = (x[:, :, h0, :] * wh0[None, None, :, None]
          + x[:, :, h1, :] * wh1[None, None, :, None])
    out = (xh[:, :, :, w0] * ww0[None, None, None, :]
           + xh[:, :, :, w1] * ww1[None, None, None, :])
    return out


def deform_conv_upsample_forward(x, w_conv, w_1x1, scale=2):
    """x: [N, Cin, H, W] (NCHW), w_conv: [Oc, Cin, 3, 3], w_1x1: [Oc, Oc, 1, 1].

    Returns [N, Oc, H*scale, W*scale] (NCHW).
    """
    xu = bilinear_upsample_nchw(x, scale) if scale > 1 else x
    n, c, h, w = xu.shape
    oc = w_conv.shape[0]
    hw = h * w

    # Fold the 1x1 conv into the 3x3 conv (exact composition of linear maps),
    # then reorder tap-major so the kernel indexes one (Oc, Cin) tile per tap.
    w1 = w_conv.reshape(oc, c * 9)                          # [Oc, Cin*9] (c,kh,kw)
    w2 = w_1x1.reshape(oc, oc)                              # [Oc, Oc]
    w_comb = jnp.dot(w2, w1).reshape(oc, c, 3, 3)           # [o, i, kh, kw]
    w_taps = jnp.transpose(w_comb, (2, 3, 0, 1)).reshape(9, oc, c)

    x_flat = xu.reshape(n, c, hw)                           # HW on the lane axis

    kernel = functools.partial(
        _fused_conv_norm_act_kernel, H=h, W=w, eps=1e-5, slope=0.2)

    flops = n * hw * (2 * oc * c * 9 + 6 * oc)              # conv + norm/act
    bytes_accessed = 4 * (n * c * hw + 9 * oc * c + n * oc * hw)

    y = pl.pallas_call(
        kernel,
        out_shape=jax.ShapeDtypeStruct((n, oc, hw), jnp.float32),
        grid=(n,),
        in_specs=[
            pl.BlockSpec((1, c, hw), lambda i: (i, 0, 0)),
            pl.BlockSpec((9, oc, c), lambda i: (0, 0, 0)),
        ],
        out_specs=pl.BlockSpec((1, oc, hw), lambda i: (i, 0, 0)),
        compiler_params=pltpu.CompilerParams(
            dimension_semantics=("parallel",)),
        cost_estimate=pl.CostEstimate(
            flops=flops,
            transcendentals=n * oc,
            bytes_accessed=bytes_accessed),
    )(x_flat, w_taps)

    return y.reshape(n, oc, h, w)                           # already NCHW


def reference_forward(x, w_conv, w_1x1, scale=2):
    """Pure-JAX reference for sanity checking."""
    oc = w_conv.shape[0]
    xu = bilinear_upsample_nchw(x, scale) if scale > 1 else x
    y = jax.lax.conv_general_dilated(
        xu, w_conv, (1, 1), ((1, 1), (1, 1)),
        dimension_numbers=('NCHW', 'OIHW', 'NCHW'))
    y = jax.lax.conv_general_dilated(
        y, w_1x1.reshape(oc, oc, 1, 1), (1, 1), ((0, 0), (0, 0)),
        dimension_numbers=('NCHW', 'OIHW', 'NCHW'))
    mean = y.mean(axis=(2, 3), keepdims=True)
    var = ((y - mean) ** 2).mean(axis=(2, 3), keepdims=True)
    y = (y - mean) / jnp.sqrt(var + 1e-5)
    return jnp.where(y > 0, y, 0.2 * y)


if __name__ == "__main__":
    # Module config: scaleFactor=2, in_channels=4, out_channels=8,
    # kernel_size=3, stride=1, padding=1, bias=False, kernel_type='ordinary'.
    key = jax.random.PRNGKey(0)
    kx, k1, k2 = jax.random.split(key, 3)

    x = jax.random.normal(kx, (2, 4, 16, 16), dtype=jnp.float32)
    w_conv = 0.1 * jax.random.normal(k1, (8, 4, 3, 3), dtype=jnp.float32)
    w_1x1 = 0.3 * jax.random.normal(k2, (8, 8, 1, 1), dtype=jnp.float32)

    out = deform_conv_upsample_forward(x, w_conv, w_1x1, scale=2)
    out = jax.block_until_ready(out)

    ref = reference_forward(x, w_conv, w_1x1, scale=2)
    assert out.shape == (2, 8, 32, 32), out.shape
    assert jnp.allclose(out, ref, atol=1e-4, rtol=1e-4), "mismatch vs reference"

    print("KERNEL_OK")
</pallas_src>

<mosaic_0001>
module attributes {stable_mosaic.version = 11 : i64} {
  func.func @_fused_conv_norm_act_kernel(%arg0: i32, %arg1: memref<1x4x1024xf32, #tpu.memory_space<vmem>>, %arg2: memref<9x8x4xf32, #tpu.memory_space<vmem>>, %arg3: memref<1x8x1024xf32, #tpu.memory_space<vmem>>) attributes {dimension_semantics = [#tpu.dimension_semantics<parallel>], iteration_bounds = array<i64: 2>, scalar_prefetch = 0 : i64, scratch_operands = 0 : i64, tpu.core_type = #tpu.core_type<tc>, window_params = [{transform_indices = @transform_0, window_bounds = array<i64: 1, 4, 1024>}, {pipeline_mode = #tpu.pipeline_mode<synchronous>, transform_indices = @transform_1, window_bounds = array<i64: 9, 8, 4>}, {transform_indices = @transform_2, window_bounds = array<i64: 1, 8, 1024>}]} {
    %c0 = arith.constant 0 : index
    %c0_0 = arith.constant 0 : index
    %c0_1 = arith.constant 0 : index
    %0 = vector.load %arg1[%c0, %c0_0, %c0_1] : memref<1x4x1024xf32, #tpu.memory_space<vmem>>, vector<1x4x1024xf32>
    %1 = vector.shape_cast %0 : vector<1x4x1024xf32> to vector<4x1024xf32>
    %2 = tpu.iota {dimensions = array<i32: 1>} : vector<1x1024xi32>
    %c5_i32 = arith.constant 5 : i32
    %3 = vector.broadcast %c5_i32 : i32 to vector<1x1024xi32>
    %4 = arith.shrsi %2, %3 : vector<1x1024xi32>
    %c31_i32 = arith.constant 31 : i32
    %5 = vector.broadcast %c31_i32 : i32 to vector<1x1024xi32>
    %6 = arith.andi %2, %5 : vector<1x1024xi32>
    %cst = arith.constant 0.000000e+00 : f32
    %7 = vector.broadcast %cst : f32 to vector<8x1024xf32>
    %c1_i32 = arith.constant 1 : i32
    %8 = vector.broadcast %c1_i32 : i32 to vector<1x1024xi32>
    %9 = arith.cmpi sge, %4, %8 : vector<1x1024xi32>
    %c1_i32_2 = arith.constant 1 : i32
    %10 = vector.broadcast %c1_i32_2 : i32 to vector<1x1024xi32>
    %11 = arith.cmpi sge, %6, %10 : vector<1x1024xi32>
    %c33_i32 = arith.constant 33 : i32
    %12 = tpu.dynamic_rotate %1 by %c33_i32 dim 1 : vector<4x1024xf32>, i32 -> vector<4x1024xf32>
    %13 = arith.andi %9, %11 : vector<1x1024xi1>
    %14 = arith.extui %13 : vector<1x1024xi1> to vector<1x1024xi32>
    %15 = arith.sitofp %14 : vector<1x1024xi32> to vector<1x1024xf32>
    %16 = vector.broadcast %15 : vector<1x1024xf32> to vector<4x1024xf32>
    %17 = arith.mulf %12, %16 : vector<4x1024xf32>
    %c0_3 = arith.constant 0 : index
    %c0_4 = arith.constant 0 : index
    %c0_5 = arith.constant 0 : index
    %18 = vector.load %arg2[%c0_3, %c0_4, %c0_5] : memref<9x8x4xf32, #tpu.memory_space<vmem>>, vector<1x8x4xf32>
    %19 = vector.shape_cast %18 : vector<1x8x4xf32> to vector<8x4xf32>
    %cst_6 = arith.constant dense<0.000000e+00> : vector<8x1024xf32>
    %20 = tpu.matmul %19, %17, %cst_6 {dimension_numbers = #tpu.dot_dimension_numbers<[1], [0], [0], [1], [0, 0, 1, 1], [], []>} : vector<8x4xf32>, vector<4x1024xf32>, vector<8x1024xf32> -> vector<8x1024xf32>
    %21 = arith.addf %7, %20 : vector<8x1024xf32>
    %c32_i32 = arith.constant 32 : i32
    %22 = tpu.dynamic_rotate %1 by %c32_i32 dim 1 : vector<4x1024xf32>, i32 -> vector<4x1024xf32>
    %23 = arith.extui %9 : vector<1x1024xi1> to vector<1x1024xi32>
    %24 = arith.sitofp %23 : vector<1x1024xi32> to vector<1x1024xf32>
    %25 = vector.broadcast %24 : vector<1x1024xf32> to vector<4x1024xf32>
    %26 = arith.mulf %22, %25 : vector<4x1024xf32>
    %c1 = arith.constant 1 : index
    %c0_7 = arith.constant 0 : index
    %c0_8 = arith.constant 0 : index
    %27 = vector.load %arg2[%c1, %c0_7, %c0_8] : memref<9x8x4xf32, #tpu.memory_space<vmem>>, vector<1x8x4xf32>
    %28 = vector.shape_cast %27 : vector<1x8x4xf32> to vector<8x4xf32>
    %cst_9 = arith.constant dense<0.000000e+00> : vector<8x1024xf32>
    %29 = tpu.matmul %28, %26, %cst_9 {dimension_numbers = #tpu.dot_dimension_numbers<[1], [0], [0], [1], [0, 0, 1, 1], [], []>} : vector<8x4xf32>, vector<4x1024xf32>, vector<8x1024xf32> -> vector<8x1024xf32>
    %30 = arith.addf %21, %29 : vector<8x1024xf32>
    %c31_i32_10 = arith.constant 31 : i32
    %31 = vector.broadcast %c31_i32_10 : i32 to vector<1x1024xi32>
    %32 = arith.cmpi slt, %6, %31 : vector<1x1024xi32>
    %c31_i32_11 = arith.constant 31 : i32
    %33 = tpu.dynamic_rotate %1 by %c31_i32_11 dim 1 : vector<4x1024xf32>, i32 -> vector<4x1024xf32>
    %34 = arith.andi %9, %32 : vector<1x1024xi1>
    %35 = arith.extui %34 : vector<1x1024xi1> to vector<1x1024xi32>
    %36 = arith.sitofp %35 : vector<1x1024xi32> to vector<1x1024xf32>
    %37 = vector.broadcast %36 : vector<1x1024xf32> to vector<4x1024xf32>
    %38 = arith.mulf %33, %37 : vector<4x1024xf32>
    %c2 = arith.constant 2 : index
    %c0_12 = arith.constant 0 : index
    %c0_13 = arith.constant 0 : index
    %39 = vector.load %arg2[%c2, %c0_12, %c0_13] : memref<9x8x4xf32, #tpu.memory_space<vmem>>, vector<1x8x4xf32>
    %40 = vector.shape_cast %39 : vector<1x8x4xf32> to vector<8x4xf32>
    %cst_14 = arith.constant dense<0.000000e+00> : vector<8x1024xf32>
    %41 = tpu.matmul %40, %38, %cst_14 {dimension_numbers = #tpu.dot_dimension_numbers<[1], [0], [0], [1], [0, 0, 1, 1], [], []>} : vector<8x4xf32>, vector<4x1024xf32>, vector<8x1024xf32> -> vector<8x1024xf32>
    %42 = arith.addf %30, %41 : vector<8x1024xf32>
    %c1_i32_15 = arith.constant 1 : i32
    %43 = vector.broadcast %c1_i32_15 : i32 to vector<1x1024xi32>
    %44 = arith.cmpi sge, %6, %43 : vector<1x1024xi32>
    %c1_i32_16 = arith.constant 1 : i32
    %45 = tpu.dynamic_rotate %1 by %c1_i32_16 dim 1 : vector<4x1024xf32>, i32 -> vector<4x1024xf32>
    %46 = arith.extui %44 : vector<1x1024xi1> to vector<1x1024xi32>
    %47 = arith.sitofp %46 : vector<1x1024xi32> to vector<1x1024xf32>
    %48 = vector.broadcast %47 : vector<1x1024xf32> to vector<4x1024xf32>
    %49 = arith.mulf %45, %48 : vector<4x1024xf32>
    %c3 = arith.constant 3 : index
    %c0_17 = arith.constant 0 : index
    %c0_18 = arith.constant 0 : index
    %50 = vector.load %arg2[%c3, %c0_17, %c0_18] : memref<9x8x4xf32, #tpu.memory_space<vmem>>, vector<1x8x4xf32>
    %51 = vector.shape_cast %50 : vector<1x8x4xf32> to vector<8x4xf32>
    %cst_19 = arith.constant dense<0.000000e+00> : vector<8x1024xf32>
    %52 = tpu.matmul %51, %49, %cst_19 {dimension_numbers = #tpu.dot_dimension_numbers<[1], [0], [0], [1], [0, 0, 1, 1], [], []>} : vector<8x4xf32>, vector<4x1024xf32>, vector<8x1024xf32> -> vector<8x1024xf32>
    %53 = arith.addf %42, %52 : vector<8x1024xf32>
    %c4 = arith.constant 4 : index
    %c0_20 = arith.constant 0 : index
    %c0_21 = arith.constant 0 : index
    %54 = vector.load %arg2[%c4, %c0_20, %c0_21] : memref<9x8x4xf32, #tpu.memory_space<vmem>>, vector<1x8x4xf32>
    %55 = vector.shape_cast %54 : vector<1x8x4xf32> to vector<8x4xf32>
    %cst_22 = arith.constant dense<0.000000e+00> : vector<8x1024xf32>
    %56 = tpu.matmul %55, %1, %cst_22 {dimension_numbers = #tpu.dot_dimension_numbers<[1], [0], [0], [1], [0, 0, 1, 1], [], []>} : vector<8x4xf32>, vector<4x1024xf32>, vector<8x1024xf32> -> vector<8x1024xf32>
    %57 = arith.addf %53, %56 : vector<8x1024xf32>
    %c31_i32_23 = arith.constant 31 : i32
    %58 = vector.broadcast %c31_i32_23 : i32 to vector<1x1024xi32>
    %59 = arith.cmpi slt, %6, %58 : vector<1x1024xi32>
    %c1023_i32 = arith.constant 1023 : i32
    %60 = tpu.dynamic_rotate %1 by %c1023_i32 dim 1 : vector<4x1024xf32>, i32 -> vector<4x1024xf32>
    %61 = arith.extui %59 : vector<1x1024xi1> to vector<1x1024xi32>
    %62 = arith.sitofp %61 : vector<1x1024xi32> to vector<1x1024xf32>
    %63 = vector.broadcast %62 : vector<1x1024xf32> to vector<4x1024xf32>
    %64 = arith.mulf %60, %63 : vector<4x1024xf32>
    %c5 = arith.constant 5 : index
    %c0_24 = arith.constant 0 : index
    %c0_25 = arith.constant 0 : index
    %65 = vector.load %arg2[%c5, %c0_24, %c0_25] : memref<9x8x4xf32, #tpu.memory_space<vmem>>, vector<1x8x4xf32>
    %66 = vector.shape_cast %65 : vector<1x8x4xf32> to vector<8x4xf32>
    %cst_26 = arith.constant dense<0.000000e+00> : vector<8x1024xf32>
    %67 = tpu.matmul %66, %64, %cst_26 {dimension_numbers = #tpu.dot_dimension_numbers<[1], [0], [0], [1], [0, 0, 1, 1], [], []>} : vector<8x4xf32>, vector<4x1024xf32>, vector<8x1024xf32> -> vector<8x1024xf32>
    %68 = arith.addf %57, %67 : vector<8x1024xf32>
    %c31_i32_27 = arith.constant 31 : i32
    %69 = vector.broadcast %c31_i32_27 : i32 to vector<1x1024xi32>
    %70 = arith.cmpi slt, %4, %69 : vector<1x1024xi32>
    %c1_i32_28 = arith.constant 1 : i32
    %71 = vector.broadcast %c1_i32_28 : i32 to vector<1x1024xi32>
    %72 = arith.cmpi sge, %6, %71 : vector<1x1024xi32>
    %c993_i32 = arith.constant 993 : i32
    %73 = tpu.dynamic_rotate %1 by %c993_i32 dim 1 : vector<4x1024xf32>, i32 -> vector<4x1024xf32>
    %74 = arith.andi %70, %72 : vector<1x1024xi1>
    %75 = arith.extui %74 : vector<1x1024xi1> to vector<1x1024xi32>
    %76 = arith.sitofp %75 : vector<1x1024xi32> to vector<1x1024xf32>
    %77 = vector.broadcast %76 : vector<1x1024xf32> to vector<4x1024xf32>
    %78 = arith.mulf %73, %77 : vector<4x1024xf32>
    %c6 = arith.constant 6 : index
    %c0_29 = arith.constant 0 : index
    %c0_30 = arith.constant 0 : index
    %79 = vector.load %arg2[%c6, %c0_29, %c0_30] : memref<9x8x4xf32, #tpu.memory_space<vmem>>, vector<1x8x4xf32>
    %80 = vector.shape_cast %79 : vector<1x8x4xf32> to vector<8x4xf32>
    %cst_31 = arith.constant dense<0.000000e+00> : vector<8x1024xf32>
    %81 = tpu.matmul %80, %78, %cst_31 {dimension_numbers = #tpu.dot_dimension_numbers<[1], [0], [0], [1], [0, 0, 1, 1], [], []>} : vector<8x4xf32>, vector<4x1024xf32>, vector<8x1024xf32> -> vector<8x1024xf32>
    %82 = arith.addf %68, %81 : vector<8x1024xf32>
    %c992_i32 = arith.constant 992 : i32
    %83 = tpu.dynamic_rotate %1 by %c992_i32 dim 1 : vector<4x1024xf32>, i32 -> vector<4x1024xf32>
    %84 = arith.extui %70 : vector<1x1024xi1> to vector<1x1024xi32>
    %85 = arith.sitofp %84 : vector<1x1024xi32> to vector<1x1024xf32>
    %86 = vector.broadcast %85 : vector<1x1024xf32> to vector<4x1024xf32>
    %87 = arith.mulf %83, %86 : vector<4x1024xf32>
    %c7 = arith.constant 7 : index
    %c0_32 = arith.constant 0 : index
    %c0_33 = arith.constant 0 : index
    %88 = vector.load %arg2[%c7, %c0_32, %c0_33] : memref<9x8x4xf32, #tpu.memory_space<vmem>>, vector<1x8x4xf32>
    %89 = vector.shape_cast %88 : vector<1x8x4xf32> to vector<8x4xf32>
    %cst_34 = arith.constant dense<0.000000e+00> : vector<8x1024xf32>
    %90 = tpu.matmul %89, %87, %cst_34 {dimension_numbers = #tpu.dot_dimension_numbers<[1], [0], [0], [1], [0, 0, 1, 1], [], []>} : vector<8x4xf32>, vector<4x1024xf32>, vector<8x1024xf32> -> vector<8x1024xf32>
    %91 = arith.addf %82, %90 : vector<8x1024xf32>
    %c31_i32_35 = arith.constant 31 : i32
    %92 = vector.broadcast %c31_i32_35 : i32 to vector<1x1024xi32>
    %93 = arith.cmpi slt, %6, %92 : vector<1x1024xi32>
    %c991_i32 = arith.constant 991 : i32
    %94 = tpu.dynamic_rotate %1 by %c991_i32 dim 1 : vector<4x1024xf32>, i32 -> vector<4x1024xf32>
    %95 = arith.andi %70, %93 : vector<1x1024xi1>
    %96 = arith.extui %95 : vector<1x1024xi1> to vector<1x1024xi32>
    %97 = arith.sitofp %96 : vector<1x1024xi32> to vector<1x1024xf32>
    %98 = vector.broadcast %97 : vector<1x1024xf32> to vector<4x1024xf32>
    %99 = arith.mulf %94, %98 : vector<4x1024xf32>
    %c8 = arith.constant 8 : index
    %c0_36 = arith.constant 0 : index
    %c0_37 = arith.constant 0 : index
    %100 = vector.load %arg2[%c8, %c0_36, %c0_37] : memref<9x8x4xf32, #tpu.memory_space<vmem>>, vector<1x8x4xf32>
    %101 = vector.shape_cast %100 : vector<1x8x4xf32> to vector<8x4xf32>
    %cst_38 = arith.constant dense<0.000000e+00> : vector<8x1024xf32>
    %102 = tpu.matmul %101, %99, %cst_38 {dimension_numbers = #tpu.dot_dimension_numbers<[1], [0], [0], [1], [0, 0, 1, 1], [], []>} : vector<8x4xf32>, vector<4x1024xf32>, vector<8x1024xf32> -> vector<8x1024xf32>
    %103 = arith.addf %91, %102 : vector<8x1024xf32>
    %cst_39 = arith.constant dense<0.000000e+00> : vector<8xf32>
    %104 = vector.multi_reduction <add>, %103, %cst_39 [1] : vector<8x1024xf32> to vector<8xf32>
    %105 = vector.shape_cast %104 : vector<8xf32> to vector<8x1xf32>
    %cst_40 = arith.constant 9.765625E-4 : f32
    %106 = vector.broadcast %cst_40 : f32 to vector<8x1xf32>
    %107 = arith.mulf %105, %106 : vector<8x1xf32>
    %108 = vector.broadcast %107 : vector<8x1xf32> to vector<8x1024xf32>
    %109 = arith.subf %103, %108 : vector<8x1024xf32>
    %110 = arith.mulf %109, %109 : vector<8x1024xf32>
    %cst_41 = arith.constant dense<0.000000e+00> : vector<8xf32>
    %111 = vector.multi_reduction <add>, %110, %cst_41 [1] : vector<8x1024xf32> to vector<8xf32>
    %112 = vector.shape_cast %111 : vector<8xf32> to vector<8x1xf32>
    %cst_42 = arith.constant 9.765625E-4 : f32
    %113 = vector.broadcast %cst_42 : f32 to vector<8x1xf32>
    %114 = arith.mulf %112, %113 : vector<8x1xf32>
    %cst_43 = arith.constant 9.99999974E-6 : f32
    %115 = vector.broadcast %cst_43 : f32 to vector<8x1xf32>
    %116 = arith.addf %114, %115 : vector<8x1xf32>
    %117 = math.rsqrt %116 : vector<8x1xf32>
    %118 = vector.broadcast %117 : vector<8x1xf32> to vector<8x1024xf32>
    %119 = arith.mulf %109, %118 : vector<8x1024xf32>
    %cst_44 = arith.constant 0.000000e+00 : f32
    %120 = vector.broadcast %cst_44 : f32 to vector<8x1024xf32>
    %121 = arith.cmpf ogt, %119, %120 : vector<8x1024xf32>
    %cst_45 = arith.constant 2.000000e-01 : f32
    %122 = vector.broadcast %cst_45 : f32 to vector<8x1024xf32>
    %123 = arith.mulf %122, %119 : vector<8x1024xf32>
    %124 = arith.select %121, %119, %123 : vector<8x1024xi1>, vector<8x1024xf32>
    %c0_46 = arith.constant 0 : index
    %c0_47 = arith.constant 0 : index
    %c0_48 = arith.constant 0 : index
    %125 = vector.load %arg3[%c0_46, %c0_47, %c0_48] : memref<1x8x1024xf32, #tpu.memory_space<vmem>>, vector<1x8x1024xf32>
    %126 = vector.shape_cast %125 : vector<1x8x1024xf32> to vector<8x1024xf32>
    %127 = vector.shape_cast %124 : vector<8x1024xf32> to vector<1x8x1024xf32>
    tpu.vector_store %arg3[%c0_46, %c0_47, %c0_48], %127 {strides = array<i32>} : memref<1x8x1024xf32, #tpu.memory_space<vmem>>, vector<1x8x1024xf32>,
    return
  }
  func.func @transform_0(%arg0: i32) -> (i32, i32, i32) {
    %c0_i32 = arith.constant 0 : i32
    %c0_i32_0 = arith.constant 0 : i32
    %c0_i32_1 = arith.constant 0 : i32
    return %arg0, %c0_i32, %c0_i32_0 : i32, i32, i32
  }
  func.func @transform_1(%arg0: i32) -> (i32, i32, i32) {
    %c0_i32 = arith.constant 0 : i32
    %c0_i32_0 = arith.constant 0 : i32
    %c0_i32_1 = arith.constant 0 : i32
    %c0_i32_2 = arith.constant 0 : i32
    return %c0_i32, %c0_i32_0, %c0_i32_1 : i32, i32, i32
  }
  func.func @transform_2(%arg0: i32) -> (i32, i32, i32) {
    %c0_i32 = arith.constant 0 : i32
    %c0_i32_0 = arith.constant 0 : i32
    %c0_i32_1 = arith.constant 0 : i32
    return %arg0, %c0_i32, %c0_i32_0 : i32, i32, i32
  }
}

</mosaic_0001>

<bundles_post_ra>
// kernel: tpu_custom_call.1
= control target key start
LH: loop header
LB: loop body
LE: loop exit
PB: predicated region body
PF: predicated region fallthrough
CT: control target
= control target key end

     0   :  { %7 = vsyncpa [#allocation3], 0  ;;  %s4246_s0 = inlined_call_operand.vmem [shape: f32[2,4,1024], index: 0, kind: input, shape index: {}]   ;;  %s4247_s1 = inlined_call_operand.vmem [shape: f32[9,8,4], index: 1, kind: input, shape index: {}]   ;;  %s4248_s2 = inlined_call_operand.hbm [shape: f32[2,8,1024], index: 2, kind: output, shape index: {}]  }
   0x1   :  { %9 = vsyncpa [#allocation3 + $0x1], 0  ;;  %s3111_s9 = smov 0   ;;  %s3113_s10 = smov 0  }
   0x2   :  { %s3115_s11 = smov 0   ;;  %s3117_s12 = smov 0  }
   0x3 LB: > { %s3132_s13 = sadd.s32 4294967295, %s3085_s12   ;;  %s2743_s14 = sadd.s32 4294967294, %s3085_s12   ;;  %s3085_s12 = sphi %s3117_s12, %s4548_s12   ;;  %s3081_s11 = sphi %s3115_s11, %s4547_s11   ;;  %s3077_s10 = sphi %s3113_s10, %s4546_s10   ;;  %s3073_s9 = sphi %s3111_s9, %s4545_s9  }
   0x4   : > { %s3136_s15 = sadd.s32 1, %s3085_s12   ;;  %s69_s16 = sadd.s32 1, %s3081_s11 }
   0x5   : > { %s66_s17 = ssub.s32 %s3085_s12, %s3136_s15  ;;  %p79_p0 = scmp.ne.s32.totalorder %s3081_s11, %s3077_s10 }
   0x6   : > { %p67_p1 = scmp.eq.s32.totalorder %s66_s17, 0  ;;  %p80_p2 = scmp.eq.s32.totalorder %s3132_s13, 1 }
   0x7   : > { %p85_p3 = scmp.ne.s32.totalorder %s3077_s10, %s3073_s9  ;;  %p86_p4 = scmp.eq.s32.totalorder %s2743_s14, 1 }
   0x8   : > { %s3147_s18 = scalar_select %p67_p1, %s3081_s11, %s69_s16  }
   0x9   : > { %p3149_p5 = por %p80_p2, %p79_p0  ;;  %p3153_p6 = por %p86_p4, %p85_p3 }
   0xa   : > { %p2746_p7 = scmp.ge.s32.totalorder %s3085_s12, 1  ;;  %p115_p8 = scmp.lt.s32.totalorder %s3085_s12, 3 }
   0xc   : > { %p116_p9 = pnand %p2746_p7, %p115_p8 }
   0xd   : > { %p137_p10 = scmp.lt.s32.totalorder (!%p116_p9), %s3132_s13, 1  ;;  %s3087_s26 = smov (!%p116_p9), 33  }
   0xe   : > { %119 = sbr.rel (%p116_p9) target bundleno = 758 (0x2f6), region = 28  ;;  %s3088_s27 = smov (!%p116_p9), 32  }
   0xf   : > { %s3089_s28 = smov (!%p116_p9), 31   ;;  %s3090_s29 = smov (!%p116_p9), 1  }
  0x10   : > { %s3091_s30 = smov (!%p116_p9), 127   ;;  %s3092_s3 = smov (!%p116_p9), 97  }
  0x11   : > { %s3094_s6 = smov (!%p116_p9), 96   ;;  %s3095_s14 = smov (!%p116_p9), 95  }
  0x12   : > { %s134_s5 = sand.u32 (!%p116_p9), 1, %s3077_s10   ;;  %s2972_s7 = sshll.u32 (!%p116_p9), %s3132_s13, 6 }
  0x13   : > { %s138_s21 = scalar_select %p137_p10, %s3132_s13, 1  ;;  %v146_v59 = vlaneseq  ;;  %vm4260_vm3 = vcmask 1043456   ;;  %vm4255_vm6 = vcmask 31744  }
  0x14   : > { %s2679_s16 = scalar_lea.hbm %s4248_s2, %s2972_s7 }
  0x15   : > { %s2971_s22 = sshll.u32 %s138_s21, 5  ;;  %v3242_v61 = vand.u32 127, %v146_v59  ;;  %v4309_v59 = vmov 0  ;;  %s2683_s21 = sshll.u32 %s2679_s16, 4  ;;  %s2684_s21 = int_to_ptr.hbm [resolvable:$true] %s2683_s21 }
  0x16   : > { %s141_s25 = scalar_lea.vmem %s4246_s0, %s2971_s22  ;;  %s2668_s22 = scalar_lea.sflag [#allocation3], %s134_s5 }
  0x17   : > { %v3164_v0 = vld [vmem:[%s141_s25] sm:$0xff]  ;;  %v3166_v1 = vld [vmem:[%s141_s25 + $0x8] sm:$0xff]  ;;  %v3168_v2 = vld [vmem:[%s141_s25 + $0x18] sm:$0xff]  ;;  %vm311_vm2 = vcmp.lt.s32.totalorder %v3242_v61, 32  ;;  %vm4254_vm14 = vcmp.lt.s32.totalorder %v3242_v61, 33  ;;  %s3037_s23 = sshra.s32 %s2684_s21, 4  ;;  %s3038_s23 = int_to_ptr.hbm [resolvable:$true] %s3037_s23 }
  0x18   : > { %191 = vst [vmem:[#allocation1] ss:$2 sm:$0xff] %v3164_v0  ;;  %v3171_v3 = vld [vmem:[%s141_s25 + $0x10] sm:$0xff]  ;;  %s3039_s24 = scalar_lea.hbm %s3038_s23, 64  ;;  %p3044_p0 = scmp.lt.s32.totalorder %s3038_s23, %s4248_s2 }
  0x19   : > { %193 = vst [vmem:[#allocation1 + $0x10] ss:$2 sm:$0xff] %v3166_v1  ;;  %p3040_p11 = scmp.ne.s32.totalorder %s3038_s23, %s3039_s24 }
  0x1a   : > { %197 = vst [vmem:[#allocation1 + $0x30] ss:$2 sm:$0xff] %v3168_v2 }
  0x1b   : > { %195 = vst [vmem:[#allocation1 + $0x20] ss:$2 sm:$0xff] %v3171_v3  ;;  %p3041_p12 = pnand %p3040_p11, %p3149_p5 }
  0x1d   : > { %p3042_p13 = pneg %p3041_p12 }
  0x1f   : > { %v198_v4 = vld.sshfl [vmem:[#allocation1] sm:$0xff pattern:$0x75316420]  ;;  %v199_v5 = vld.sshfl [vmem:[#allocation1 + $0x8] sm:$0xff pattern:$0x75316420] }
  0x20   : > { %272 = vst [vmem:[#allocation1] ss:$2 sm:$0xff] %v3164_v0  ;;  %v200_v6 = vld.sshfl [vmem:[#allocation1 + $0x10] sm:$0xff pattern:$0x75316420]  ;;  %216 = vrot.lane.b32.xlu2 %v199_v5, %s3087_s26 }
  0x21   : > { %v201_v7 = vld.sshfl [vmem:[#allocation1 + $0x18] sm:$0xff pattern:$0x75316420]  ;;  %v204_v8 = vld.sshfl [vmem:[#allocation1 + $0x30] sm:$0xff pattern:$0x75316420] }
  0x22   : > { %274 = vst [vmem:[#allocation1 + $0x10] ss:$2 sm:$0xff] %v3166_v1  ;;  %v205_v9 = vld.sshfl [vmem:[#allocation1 + $0x38] sm:$0xff pattern:$0x75316420] }
  0x23   : > { %278 = vst [vmem:[#allocation1 + $0x30] ss:$2 sm:$0xff] %v3168_v2  ;;  %v202_v10 = vld.sshfl [vmem:[#allocation1 + $0x20] sm:$0xff pattern:$0x75316420] }
  0x24   : > { %v203_v11 = vld.sshfl [vmem:[#allocation1 + $0x28] sm:$0xff pattern:$0x75316420] }
  0x25   : > { %276 = vst [vmem:[#allocation1 + $0x20] ss:$2 sm:$0xff] %v3171_v3 }
  0x27   : > { %v280_v12 = vld.sshfl [vmem:[#allocation1 + $0x8] sm:$0xff pattern:$0x75316420]  ;;  %v279_v13 = vld.sshfl [vmem:[#allocation1] sm:$0xff pattern:$0x75316420] }
  0x28   : > { %297 = vrot.lane.b32.xlu0 %v280_v12, %s3088_s27  ;;  %295 = vrot.lane.b32.xlu1 %v279_v13, %s3088_s27  ;;  %730 = vst [vmem:[#allocation1] ss:$2 sm:$0xff] %v3164_v0 }
  0x29   : > { %v281_v14 = vld.sshfl [vmem:[#allocation1 + $0x10] sm:$0xff pattern:$0x75316420]  ;;  %v282_v15 = vld.sshfl [vmem:[#allocation1 + $0x18] sm:$0xff pattern:$0x75316420] }
  0x2a   : > { %732 = vst [vmem:[#allocation1 + $0x10] ss:$2 sm:$0xff] %v3166_v1  ;;  %v285_v16 = vld.sshfl [vmem:[#allocation1 + $0x30] sm:$0xff pattern:$0x75316420] }
  0x2b   : > { %v286_v17 = vld.sshfl [vmem:[#allocation1 + $0x38] sm:$0xff pattern:$0x75316420] }
  0x2c   : > { %736 = vst [vmem:[#allocation1 + $0x30] ss:$2 sm:$0xff] %v3168_v2  ;;  %309 = vrot.lane.b32.xlu2 %v286_v17, %s3088_s27  ;;  %v283_v18 = vld.sshfl [vmem:[#allocation1 + $0x20] sm:$0xff pattern:$0x75316420] }
  0x2d   : > { %v284_v19 = vld.sshfl [vmem:[#allocation1 + $0x28] sm:$0xff pattern:$0x75316420] }
  0x2e   : > { %734 = vst [vmem:[#allocation1 + $0x20] ss:$2 sm:$0xff] %v3171_v3 }
  0x2f   : > { %v738_v20 = vld.sshfl [vmem:[#allocation1 + $0x8] sm:$0xff pattern:$0x75316420]  ;;  %v737_v21 = vld.sshfl [vmem:[#allocation1] sm:$0xff pattern:$0x75316420] }
  0x30   : > { %299 = vrot.lane.b32.xlu0 %v281_v14, %s3088_s27  ;;  %301 = vrot.lane.b32.xlu1 %v282_v15, %s3088_s27  ;;  %1007 = vst [vmem:[#allocation1] ss:$2 sm:$0xff] %v3164_v0 }
  0x31   : > { %v740_v22 = vld.sshfl [vmem:[#allocation1 + $0x18] sm:$0xff pattern:$0x75316420]  ;;  %v739_v23 = vld.sshfl [vmem:[#allocation1 + $0x10] sm:$0xff pattern:$0x75316420] }
  0x32   : > { %1009 = vst [vmem:[#allocation1 + $0x10] ss:$2 sm:$0xff] %v3166_v1 }
  0x33   : > { %v743_v24 = vld.sshfl [vmem:[#allocation1 + $0x30] sm:$0xff pattern:$0x75316420]  ;;  %v744_v25 = vld.sshfl [vmem:[#allocation1 + $0x38] sm:$0xff pattern:$0x75316420] }
  0x34   : > { %305 = vrot.lane.b32.xlu2 %v284_v19, %s3088_s27  ;;  %1013 = vst [vmem:[#allocation1 + $0x30] ss:$2 sm:$0xff] %v3168_v2 }
  0x35   : > { %v742_v26 = vld.sshfl [vmem:[#allocation1 + $0x28] sm:$0xff pattern:$0x75316420]  ;;  %v741_v29 = vld.sshfl [vmem:[#allocation1 + $0x20] sm:$0xff pattern:$0x75316420] }
  0x36   : > { %1011 = vst [vmem:[#allocation1 + $0x20] ss:$2 sm:$0xff] %v3171_v3 }
  0x37   : > { %v1015_v30 = vld.sshfl [vmem:[#allocation1 + $0x8] sm:$0xff pattern:$0x75316420]  ;;  %v1014_v31 = vld.sshfl [vmem:[#allocation1] sm:$0xff pattern:$0x75316420] }
  0x38   : > { %307 = vrot.lane.b32.xlu0 %v285_v16, %s3088_s27  ;;  %303 = vrot.lane.b32.xlu1 %v283_v18, %s3088_s27  ;;  %1278 = vst [vmem:[#allocation1] ss:$2 sm:$0xff] %v3164_v0  ;;  %v3093_v16 = vmov 0.0   ;;  %s3043_s27 = scalar_lea.hbm %s4248_s2, 128 }
  0x39   : > { %v1016_v27 = vld.sshfl [vmem:[#allocation1 + $0x10] sm:$0xff pattern:$0x75316420]  ;;  %v1017_v28 = vld.sshfl [vmem:[#allocation1 + $0x18] sm:$0xff pattern:$0x75316420]  ;;  %p3045_p1 = scmp.lt.s32.totalorder %s3043_s27, %s3039_s24 }
  0x3a   : > { %1280 = vst [vmem:[#allocation1 + $0x10] ss:$2 sm:$0xff] %v3166_v1 }
  0x3b   : > { %v1021_v32 = vld.sshfl [vmem:[#allocation1 + $0x38] sm:$0xff pattern:$0x75316420]  ;;  %v1020_v36 = vld.sshfl [vmem:[#allocation1 + $0x30] sm:$0xff pattern:$0x75316420]  ;;  %p3046_p2 = por %p3045_p1, %p3044_p0 }
  0x3c   : > { %220 = vrot.lane.b32.xlu2 %v201_v7, %s3087_s26  ;;  %1284 = vst [vmem:[#allocation1 + $0x30] ss:$2 sm:$0xff] %v3168_v2 }
  0x3d   : > { %v1018_v35 = vld.sshfl [vmem:[#allocation1 + $0x20] sm:$0xff pattern:$0x75316420]  ;;  %v1019_v39 = vld.sshfl [vmem:[#allocation1 + $0x28] sm:$0xff pattern:$0x75316420]  ;;  %p3047_p3 = pnand %p3046_p2, %p3042_p13 }
  0x3e   : > { %1282 = vst [vmem:[#allocation1 + $0x20] ss:$2 sm:$0xff] %v3171_v3 }
  0x3f   : > { %v3203_v37 = vld.sshfl [vmem:[#allocation1] sm:$0xff pattern:$0x75316420]  ;;  %v3206_v38 = vld.sshfl [vmem:[#allocation1 + $0x8] sm:$0xff pattern:$0x75316420] }
  0x40   : > { %218 = vrot.lane.b32.xlu0 %v200_v6, %s3087_s26  ;;  %214 = vrot.lane.b32.xlu1 %v198_v4, %s3087_s26  ;;  %1480 = vst [vmem:[#allocation1] ss:$2 sm:$0xff] %v3164_v0  ;;  %v3252_v6 = vadd.s32 128, %v3242_v61 }
  0x41   : > { %v3198_v33 = vld.sshfl [vmem:[#allocation1 + $0x10] sm:$0xff pattern:$0x75316420]  ;;  %v3200_v34 = vld.sshfl [vmem:[#allocation1 + $0x18] sm:$0xff pattern:$0x75316420] }
  0x42   : > { %1482 = vst [vmem:[#allocation1 + $0x10] ss:$2 sm:$0xff] %v3166_v1 }
  0x43   : > { %v3210_v40 = vld.sshfl [vmem:[#allocation1 + $0x30] sm:$0xff pattern:$0x75316420]  ;;  %v3212_v41 = vld.sshfl [vmem:[#allocation1 + $0x38] sm:$0xff pattern:$0x75316420] }
  0x44   : > { %226 = vrot.lane.b32.xlu2 %v204_v8, %s3087_s26  ;;  %1486 = vst [vmem:[#allocation1 + $0x30] ss:$2 sm:$0xff] %v3168_v2  ;;  %v156_v8 = vshra.s32 %v3252_v6, 5 }
  0x45   : > { %v3215_v42 = vld.sshfl [vmem:[#allocation1 + $0x20] sm:$0xff pattern:$0x75316420]  ;;  %v3217_v43 = vld.sshfl [vmem:[#allocation1 + $0x28] sm:$0xff pattern:$0x75316420] }
  0x46   : > { %1484 = vst [vmem:[#allocation1 + $0x20] ss:$2 sm:$0xff] %v3171_v3  ;;  %vm3269_vm0 = vcmp.ge.s32.totalorder %v156_v8, 1 }
  0x47   : > { %v1487_v48 = vld.sshfl [vmem:[#allocation1] sm:$0xff pattern:$0x75316420]  ;;  %v1488_v49 = vld.sshfl [vmem:[#allocation1 + $0x8] sm:$0xff pattern:$0x75316420] }
  0x48   : > { %228 = vrot.lane.b32.xlu0 %v205_v9, %s3087_s26  ;;  %224 = vrot.lane.b32.xlu1 %v203_v11, %s3087_s26  ;;  %1757 = vst [vmem:[#allocation1] ss:$2 sm:$0xff] %v3164_v0  ;;  %v4266_v9 = vshra.s32 %v3242_v61, 5  ;;  %v2759_v17 = vsel %vm3269_vm0, 1.0, %v3093_v16 }
  0x49   : > { %v1490_v44 = vld.sshfl [vmem:[#allocation1 + $0x18] sm:$0xff pattern:$0x75316420]  ;;  %v1489_v45 = vld.sshfl [vmem:[#allocation1 + $0x10] sm:$0xff pattern:$0x75316420] }
  0x4a   : > { %1759 = vst [vmem:[#allocation1 + $0x10] ss:$2 sm:$0xff] %v3166_v1  ;;  %vm3275_vm1 = vcmp.ge.s32.totalorder %v4266_v9, 1 }
  0x4b   : > { %v1493_v50 = vld.sshfl [vmem:[#allocation1 + $0x30] sm:$0xff pattern:$0x75316420]  ;;  %v1494_v53 = vld.sshfl [vmem:[#allocation1 + $0x38] sm:$0xff pattern:$0x75316420] }
  0x4c   : > { %757 = vrot.lane.b32.xlu2 %v739_v23, %s3089_s28  ;;  %1763 = vst [vmem:[#allocation1 + $0x30] ss:$2 sm:$0xff] %v3168_v2  ;;  %v2758_v18 = vsel %vm3275_vm1, 1.0, %v3093_v16 }
  0x4d   : > { %v1491_v46 = vld.sshfl [vmem:[#allocation1 + $0x20] sm:$0xff pattern:$0x75316420]  ;;  %v1492_v47 = vld.sshfl [vmem:[#allocation1 + $0x28] sm:$0xff pattern:$0x75316420] }
  0x4e   : > { %1761 = vst [vmem:[#allocation1 + $0x20] ss:$2 sm:$0xff] %v3171_v3 }
  0x4f   : > { %v1765_v51 = vld.sshfl [vmem:[#allocation1 + $0x8] sm:$0xff pattern:$0x75316420]  ;;  %v1764_v52 = vld.sshfl [vmem:[#allocation1] sm:$0xff pattern:$0x75316420] }
  0x50   : > { %222 = vrot.lane.b32.xlu0 %v202_v10, %s3087_s26  ;;  %755 = vrot.lane.b32.xlu1 %v738_v20, %s3089_s28  ;;  %2034 = vst [vmem:[#allocation1] ss:$2 sm:$0xff] %v3164_v0  ;;  %v3264_v10 = vadd.s32 384, %v3242_v61 }
  0x51   : > { %v1767_v55 = vld.sshfl [vmem:[#allocation1 + $0x18] sm:$0xff pattern:$0x75316420]  ;;  %v1766_v58 = vld.sshfl [vmem:[#allocation1 + $0x10] sm:$0xff pattern:$0x75316420] }
  0x52   : > { %2036 = vst [vmem:[#allocation1 + $0x10] ss:$2 sm:$0xff] %v3166_v1  ;;  %v158_v20 = vshra.s32 %v3264_v10, 5 }
  0x53   : > { %v3231_v56 = vld.sshfl [vmem:[#allocation1 + $0x38] sm:$0xff pattern:$0x75316420]  ;;  %v3233_v57 = vld.sshfl [vmem:[#allocation1 + $0x30] sm:$0xff pattern:$0x75316420] }
  0x54   : > { %767 = vrot.lane.b32.xlu2 %v744_v25, %s3089_s28  ;;  %2040 = vst [vmem:[#allocation1 + $0x30] ss:$2 sm:$0xff] %v3168_v2  ;;  %vm3317_vm5 = vcmp.ge.s32.totalorder %v158_v20, 1 }
  0x55   : > { %v1768_v62 = vld.sshfl [vmem:[#allocation1 + $0x20] sm:$0xff pattern:$0x75316420]  ;;  %v1769_v5 = vld.sshfl [vmem:[#allocation1 + $0x28] sm:$0xff pattern:$0x75316420] }
  0x56   : > { %2038 = vst [vmem:[#allocation1 + $0x20] ss:$2 sm:$0xff] %v3171_v3 }
  0x58   : > { %759 = vrot.lane.b32.xlu1 %v740_v22, %s3089_s28  ;;  %753 = vrot.lane.b32.xlu0 %v737_v21, %s3089_s28  ;;  %v3297_v21 = vld.sshfl [vmem:[#allocation1 + $0x8] sm:$0xff pattern:$0x75316420]  ;;  %v2041_v22 = vld.sshfl [vmem:[#allocation1] sm:$0xff pattern:$0x75316420] }
  0x59   : > { %v3244_v63 = vld.sshfl [vmem:[#allocation1 + $0x18] sm:$0xff pattern:$0x75316420]  ;;  %v3246_v4 = vld.sshfl [vmem:[#allocation1 + $0x10] sm:$0xff pattern:$0x75316420] }
  0x5a   : > { %2305 = vst [vmem:[#allocation1 + $0x10] ss:$2 sm:$0xff] %v3166_v1  ;;  %v3261_v1 = vadd.s32 256, %v3242_v61 }
  0x5b   : > { %2303 = vst [vmem:[#allocation1] ss:$2 sm:$0xff] %v3164_v0  ;;  %v4363_v0 = vmov 0 }
  0x5c   : > { %761 = vrot.lane.b32.xlu2 %v741_v29, %s3089_s28  ;;  %v157_v19 = vshra.s32 %v3261_v1, 5  ;;  %v3306_v29 = vadd.s32 768, %v3242_v61 }
  0x5d   : > { %v3282_v14 = vld.sshfl [vmem:[#allocation1 + $0x20] sm:$0xff pattern:$0x75316420]  ;;  %v3284_v15 = vld.sshfl [vmem:[#allocation1 + $0x28] sm:$0xff pattern:$0x75316420] }
  0x5e   : > { %2307 = vst [vmem:[#allocation1 + $0x20] ss:$2 sm:$0xff] %v3171_v3  ;;  %vm3311_vm4 = vcmp.ge.s32.totalorder %v157_v19, 1 }
  0x60   : > { %765 = vrot.lane.b32.xlu1 %v743_v24, %s3089_s28  ;;  %763 = vrot.lane.b32.xlu0 %v742_v26, %s3089_s28 }
  0x64   : > { %1030 = vrot.lane.b32.xlu2 %v1014_v31, %s3090_s29  ;;  %v3329_v31 = vadd.s32 896, %v3242_v61 }
  0x68   : > { %1034 = vrot.lane.b32.xlu1 %v1016_v27, %s3090_s29  ;;  %1032 = vrot.lane.b32.xlu0 %v1015_v30, %s3090_s29  ;;  %v3326_v30 = vld [vmem:[%s4247_s1 + $0x8] sm:$0xff] }
  0x6c   : > { %1040 = vrot.lane.b32.xlu2 %v1019_v39, %s3090_s29  ;;  %v2760_v39 = vsel %vm3311_vm4, 1.0, %v3093_v16 }
  0x70   : > { %1044 = vrot.lane.b32.xlu1 %v1021_v32, %s3090_s29  ;;  %1036 = vrot.lane.b32.xlu0 %v1017_v28, %s3090_s29  ;;  %v3332_v32 = vadd.s32 512, %v3242_v61 }
  0x74   : > { %1507 = vrot.lane.b32.xlu2 %v1489_v45, %s3091_s30  ;;  %v4249_v45 = vshra.s32 %v3306_v29, 5 }
  0x76   : > { %vm3367_vm7 = vcmp.ge.s32.totalorder %v4249_v45, 1 }
  0x78   : > { %1038 = vrot.lane.b32.xlu1 %v1018_v35, %s3090_s29  ;;  %1042 = vrot.lane.b32.xlu0 %v1020_v36, %s3090_s29  ;;  %v3337_v36 = vadd.s32 640, %v3242_v61 }
  0x7a   : > { %v3227_v54 = vpop.permute.xlu2 %216 }
  0x7c   : > { %1505 = vrot.lane.b32.xlu2 %v1488_v49, %s3091_s30 }
  0x80   : > { %1509 = vrot.lane.b32.xlu0 %v1490_v44, %s3091_s30  ;;  %1503 = vrot.lane.b32.xlu1 %v1487_v48, %s3091_s30  ;;  %v2761_v44 = vsel %vm3317_vm5, 1.0, %v3093_v16 }
  0x84   : > { %1517 = vrot.lane.b32.xlu2 %v1494_v53, %s3091_s30 }
  0x86   : > { %v3238_v60 = vpop.permute.xlu2 %309 }
  0x88   : > { %1511 = vrot.lane.b32.xlu0 %v1491_v46, %s3091_s30  ;;  %1515 = vrot.lane.b32.xlu1 %v1493_v50, %s3091_s30  ;;  %v3354_v46 = vld.sshfl [vmem:[#allocation1 + $0x38] sm:$0xff pattern:$0x75316420]  ;;  %v4264_v50 = vshra.s32 %v3329_v31, 5 }
  0x8a   : > { %vm3376_vm8 = vcmp.ge.s32.totalorder %v4264_v50, 1 }
  0x8b   : > { %v4310_v59 = vsel %vm3376_vm8, 4294967295, %v4309_v59 }
  0x8c   : > { %1786 = vrot.lane.b32.xlu2 %v1767_v55, %s3092_s3  ;;  %v4263_v55 = vshra.s32 %v3337_v36, 5 }
  0x8e   : > { %v3254_v7 = vpop.permute.xlu2 %305  ;;  %vm3394_vm10 = vcmp.ge.s32.totalorder %v4263_v55, 1  ;;  %v4337_v55 = vmov 0 }
  0x90   : > { %1513 = vrot.lane.b32.xlu0 %v1492_v47, %s3091_s30  ;;  %1784 = vrot.lane.b32.xlu1 %v1766_v58, %s3092_s3  ;;  %v2047_v47 = vld.sshfl [vmem:[#allocation1 + $0x30] sm:$0xff pattern:$0x75316420]  ;;  %v4307_v58 = vmov 0 }
  0x91   : > { %2309 = vst [vmem:[#allocation1 + $0x30] ss:$2 sm:$0xff] %v3168_v2  ;;  %v4308_v58 = vsel %vm3367_vm7, 4294967295, %v4307_v58  ;;  %v165_v2 = vand.u32 31, %v3261_v1 }
  0x93   : > { %vm3415_vm11 = vcmp.ge.s32.totalorder %v165_v2, 1 }
  0x94   : > { %1788 = vrot.lane.b32.xlu2 %v1768_v62, %s3092_s3 }
  0x96   : > { %v3280_v13 = vpop.permute.xlu2 %220 }
  0x98   : > { %1782 = vrot.lane.b32.xlu1 %v1765_v51, %s3092_s3  ;;  %1780 = vrot.lane.b32.xlu0 %v1764_v52, %s3092_s3  ;;  %v4265_v51 = vshra.s32 %v3332_v32, 5 }
  0x9a   : > { %v298_v23 = vpop.permute.xlu0 %297  ;;  %v296_v24 = vpop.permute.xlu1 %295  ;;  %vm3382_vm9 = vcmp.ge.s32.totalorder %v4265_v51, 1 }
  0x9b   : > { %v318_v25 = vsel %vm311_vm2, %v296_v24, %v298_v23  ;;  %v319_v26 = vsel %vm311_vm2, %v3238_v60, %v296_v24  ;;  %v2765_v24 = vsel %vm3376_vm8, 1.0, %v3093_v16 }
  0x9c   : > { %v337_v27 = vmul.f32 %v2759_v17, %v318_v25  ;;  %v336_v28 = vmul.f32 %v2758_v18, %v319_v26  ;;  %1790 = vrot.lane.b32.xlu2 %v1769_v5, %s3092_s3  ;;  %v166_v5 = vand.u32 31, %v3264_v10  ;;  %v164_v17 = vand.u32 31, %v3252_v6 }
  0x9d   : > { %v2762_v25 = vsel %vm3382_vm9, 1.0, %v3093_v16  ;;  %v4315_v26 = vmov 0 }
  0x9e   : > { %2769 = vmatpush.msk.msra.mxu1 %vm4260_vm3, %v337_v27  ;;  %2767 = vmatpush.msk.msra.mxu0 %vm4260_vm3, %v336_v28  ;;  %v3334_v35 = vpop.permute.xlu2 %226  ;;  %v4316_v26 = vsel %vm3415_vm11, 4294967295, %v4315_v26  ;;  %vm3424_vm12 = vcmp.ge.s32.totalorder %v166_v5, 1  ;;  %v4317_v28 = vmov 0  ;;  %vm3430_vm13 = vcmp.ge.s32.totalorder %v164_v17, 1 }
  0x9f   : > { %2768 = vmatmul.msk.f32.vlgmr.msra.gmra.mxu0 %vm4255_vm6, %v3326_v30  ;;  %2770 = vmatmul.msk.f32.vlgmr.msra.gmra.mxu1 %vm4255_vm6, %v3326_v30  ;;  %v4318_v28 = vsel %vm3424_vm12, 4294967295, %v4317_v28  ;;  %vm242_vm15 = vmand %vm3317_vm5, %vm3424_vm12 }
  0xa0   : > { %1794 = vrot.lane.b32.xlu1 %v3231_v56, %s3092_s3  ;;  %1792 = vrot.lane.b32.xlu0 %v3233_v57, %s3092_s3  ;;  %vm4321_vm12 = vmand %vm3311_vm4, %vm3415_vm11 }
  0xa2   : > { %v300_v48 = vpop.permute.xlu0 %299  ;;  %v302_v49 = vpop.permute.xlu1 %301 }
  0xa3   : > { %v317_v52 = vsel %vm311_vm2, %v298_v23, %v300_v48  ;;  %v316_v53 = vsel %vm311_vm2, %v300_v48, %v302_v49  ;;  %v2764_v23 = vsel %vm3367_vm7, 1.0, %v3093_v16 }
  0xa4   : > { %v338_v56 = vmul.f32 %v2760_v39, %v317_v52  ;;  %v339_v57 = vmul.f32 %v2761_v44, %v316_v53  ;;  %2057 = vrot.lane.b32.xlu2 %v2041_v22, %s3094_s6  ;;  %v4319_v39 = vmov 0 }
  0xa5   : > { %v4320_v39 = vsel %vm3430_vm13, 4294967295, %v4319_v39 }
  0xa6   : > { %2771 = vmatpush.msk.msra.mxu2 %vm4260_vm3, %v338_v56  ;;  %2773 = vmatpush.msk.msra.mxu3 %vm4260_vm3, %v339_v57  ;;  %v3388_v18 = vpop.permute.xlu2 %757 }
  0xa7   : > { %2772 = vmatmul.msk.f32.vlgmr.msra.gmra.mxu2 %vm4255_vm6, %v3326_v30  ;;  %2774 = vmatmul.msk.f32.vlgmr.msra.gmra.mxu3 %vm4255_vm6, %v3326_v30 }
  0xa8   : > { %2063 = vrot.lane.b32.xlu1 %v3244_v63, %s3094_s6  ;;  %2061 = vrot.lane.b32.xlu0 %v3246_v4, %s3094_s6  ;;  %v2763_v4 = vsel %vm3394_vm10, 1.0, %v3093_v16 }
  0xaa   : > { %v308_v63 = vpop.permute.xlu0 %307  ;;  %v304_v27 = vpop.permute.xlu1 %303 }
  0xab   : > { %v312_v44 = vsel %vm311_vm2, %v308_v63, %v3238_v60  ;;  %v313_v48 = vsel %vm311_vm2, %v3254_v7, %v308_v63  ;;  %v314_v52 = vsel %vm311_vm2, %v304_v27, %v3254_v7  ;;  %v315_v53 = vsel %vm311_vm2, %v302_v49, %v304_v27  ;;  %vm240_vm2 = vmand %vm3269_vm0, %vm3430_vm13 }
  0xac   : > { %v342_v56 = vmul.f32 %v2764_v23, %v313_v48  ;;  %v343_v57 = vmul.f32 %v2765_v24, %v312_v44  ;;  %v340_v45 = vmul.f32 %v2762_v25, %v315_v53  ;;  %2069 = vrot.lane.b32.xlu2 %v2047_v47, %s3094_s6  ;;  %v341_v60 = vmul.f32 %v2763_v4, %v314_v52 }
  0xad   : > { %v163_v7 = vand.u32 31, %v3242_v61  ;;  %v170_v49 = vand.u32 31, %v3329_v31  ;;  %v169_v23 = vand.u32 31, %v3306_v29  ;;  %v2753_v24 = vsel %vm242_vm15, 1.0, %v3093_v16 }
  0xae   : > { %2775 = vmatpush.msk.msrb.mxu0 %vm4260_vm3, %v340_v45  ;;  %2779 = vmatpush.msk.msrb.mxu2 %vm4260_vm3, %v342_v56  ;;  %v3462_v47 = vpop.permute.xlu2 %767  ;;  %v2752_v45 = vsel %vm4321_vm12, 1.0, %v3093_v16  ;;  %v2751_v25 = vsel %vm240_vm2, 1.0, %v3093_v16  ;;  %v4324_v27 = vmov 0 }
  0xaf   : > { %2781 = vmatpush.msk.msrb.mxu3 %vm4260_vm3, %v343_v57  ;;  %2780 = vmatmul.msk.f32.vlgmr.msrb.gmra.mxu2 %vm4255_vm6, %v3326_v30  ;;  %vm3486_vm13 = vcmp.ge.s32.totalorder %v163_v7, 1  ;;  %vm3496_vm12 = vcmp.ge.s32.totalorder %v170_v49, 1  ;;  %vm3511_vm15 = vcmp.ge.s32.totalorder %v169_v23, 1 }
  0xb0   : > { %2065 = vrot.lane.b32.xlu1 %v3282_v14, %s3094_s6  ;;  %2059 = vrot.lane.b32.xlu0 %v3297_v21, %s3094_s6  ;;  %v4322_v14 = vmov 0  ;;  %v2312_v21 = vld.sshfl [vmem:[#allocation1 + $0x10] sm:$0xff pattern:$0x75316420]  ;;  %v4325_v27 = vsel %vm3496_vm12, 4294967295, %v4324_v27  ;;  %vm239_vm2 = vmand %vm3275_vm1, %vm3486_vm13 }
  0xb1   : > { %2777 = vmatpush.msk.msrb.mxu1 %vm4260_vm3, %v341_v60  ;;  %2776 = vmatmul.msk.f32.vlgmr.msrb.gmra.mxu0 %vm4255_vm6, %v3326_v30  ;;  %v4323_v14 = vsel %vm3486_vm13, 4294967295, %v4322_v14  ;;  %v3518_v60 = vld [vmem:[%s4247_s1] sm:$0xff]  ;;  %vm4328_vm13 = vcmask 31744  }
  0xb2   : > { %v219_v63 = vpop.permute.xlu0 %218  ;;  %v215_v4 = vpop.permute.xlu1 %214  ;;  %2778 = vmatmul.msk.f32.vlgmr.msrb.gmra.mxu1 %vm4255_vm6, %v3326_v30  ;;  %2782 = vmatmul.msk.f32.vlgmr.msrb.gmra.mxu3 %vm4255_vm6, %v3326_v30  ;;  %v4326_v30 = vmov 0  ;;  %vm245_vm6 = vmand %vm3367_vm7, %vm3511_vm15  ;;  %vm4342_vm7 = vcmask 31744  }
  0xb3   : > { %v235_v44 = vsel %vm4254_vm14, %v219_v63, %v3280_v13  ;;  %v236_v48 = vsel %vm4254_vm14, %v3227_v54, %v219_v63  ;;  %v237_v52 = vsel %vm4254_vm14, %v215_v4, %v3227_v54  ;;  %v4327_v30 = vsel %vm3511_vm15, 4294967295, %v4326_v30  ;;  %vm246_vm14 = vmand %vm3376_vm8, %vm3496_vm12 }
  0xb4   : > { %v265_v53 = vmul.f32 %v2752_v45, %v236_v48  ;;  %v266_v56 = vmul.f32 %v2753_v24, %v235_v44  ;;  %v264_v57 = vmul.f32 %v2751_v25, %v237_v52  ;;  %2330 = vrot.lane.b32.xlu2 %v2312_v21, %s3095_s14  ;;  %v167_v54 = vand.u32 31, %v3332_v32  ;;  %v2311_v48 = vld.sshfl [vmem:[#allocation1 + $0x8] sm:$0xff pattern:$0x75316420]  ;;  %vm4343_vm8 = vmmov %vm4342_vm7 }
  0xb5   : > { %v168_v45 = vand.u32 31, %v3337_v36  ;;  %v2750_v25 = vsel %vm239_vm2, 1.0, %v3093_v16  ;;  %v2757_v21 = vsel %vm246_vm14, 1.0, %v3093_v16  ;;  %v2756_v63 = vsel %vm245_vm6, 1.0, %v3093_v16 }
  0xb6   : > { %2785 = vmatpush.msk.msra.mxu1 %vm4260_vm3, %v264_v57  ;;  %2787 = vmatpush.msk.msra.mxu2 %vm4260_vm3, %v265_v53  ;;  %v3537_v24 = vpop.permute.xlu2 %761  ;;  %vm3549_vm12 = vcmp.ge.s32.totalorder %v167_v54, 1  ;;  %v4329_v44 = vmov 0  ;;  %vm4334_vm6 = vcmp.lt.s32.totalorder %v3242_v61, 33 }
  0xb7   : > { %2789 = vmatpush.msk.msra.mxu3 %vm4260_vm3, %v266_v56  ;;  %2788 = vmatmul.msk.f32.vlgmr.msra.gmra.mxu2 %vm4328_vm13, %v3518_v60  ;;  %v4330_v44 = vsel %vm3549_vm12, 4294967295, %v4329_v44  ;;  %vm4331_vm3 = vmmov %vm4328_vm13  ;;  %vm3559_vm2 = vcmp.ge.s32.totalorder %v168_v45, 1 }
  0xb8   : > { %2067 = vrot.lane.b32.xlu1 %v3284_v15, %s3094_s6  ;;  %2071 = vrot.lane.b32.xlu0 %v3354_v46, %s3094_s6  ;;  %v4332_v15 = vmov 0  ;;  %vm4335_vm14 = vmmov %vm4334_vm6  ;;  %s2747_s6 = sshll.u32 %s134_s5, 6 }
  0xb9   : > { %v4333_v15 = vsel %vm3559_vm2, 4294967295, %v4332_v15  ;;  %vm4336_vm15 = vmmov %vm4334_vm6  ;;  %s136_s13 = scalar_lea.vmem [#allocation2], %s2747_s6 }
  0xba   : > { %v229_v52 = vpop.permute.xlu0 %228  ;;  %v225_v53 = vpop.permute.xlu1 %224  ;;  %2786 = vmatmul.msk.f32.vlgmr.msra.gmra.mxu1 %vm4328_vm13, %v3518_v60  ;;  %2790 = vmatmul.msk.f32.vlgmr.msra.gmra.mxu3 %vm4331_vm3, %v3518_v60  ;;  %vm3573_vm3 = vcmp.lt.s32.totalorder %v165_v2, 31  ;;  %vm243_vm13 = vmand %vm3382_vm9, %vm3549_vm12  ;;  %s2681_s17 = sshll.u32 %s136_s13, 4  ;;  %s2682_s17 = int_to_ptr.vmem [resolvable:$true] %s2681_s17 }
  0xbb   : > { %v231_v46 = vsel %vm4334_vm6, %v3334_v35, %v229_v52  ;;  %v238_v56 = vsel %vm4335_vm14, %v229_v52, %v215_v4  ;;  %v232_v57 = vsel %vm4336_vm15, %v225_v53, %v3334_v35  ;;  %v4338_v55 = vsel %vm3573_vm3, 4294967295, %v4337_v55  ;;  %v2313_v4 = vld.sshfl [vmem:[#allocation1 + $0x18] sm:$0xff pattern:$0x75316420]  ;;  %vm244_vm15 = vmand %vm3394_vm10, %vm3559_vm2 }
  0xbc   : > { %v263_v50 = vmul.f32 %v2750_v25, %v238_v56  ;;  %v270_v51 = vmul.f32 %v2757_v21, %v231_v46  ;;  %v269_v9 = vmul.f32 %v2756_v63, %v232_v57  ;;  %2328 = vrot.lane.b32.xlu2 %v2311_v48, %s3095_s14  ;;  %vm4339_vm6 = vcmask 1043456   ;;  %v2310_v35 = vld.sshfl [vmem:[#allocation1] sm:$0xff pattern:$0x75316420]  ;;  %vm780_vm11 = vmand %vm3311_vm4, %vm3573_vm3 }
  0xbd   : > { %vm4340_vm14 = vmmov %vm4339_vm6  ;;  %v2755_v3 = vsel %vm244_vm15, 1.0, %v3093_v16  ;;  %vm3607_vm4 = vcmp.lt.s32.totalorder %v166_v5, 31  ;;  %v2317_v25 = vld.sshfl [vmem:[#allocation1 + $0x38] sm:$0xff pattern:$0x75316420]  ;;  %v4346_v48 = vmov 0 }
  0xbe   : > { %2783 = vmatpush.msk.msra.mxu0 %vm4339_vm6, %v263_v50  ;;  %2795 = vmatpush.msk.msrb.mxu2 %vm4340_vm14, %v269_v9  ;;  %v3592_v2 = vpop.permute.xlu2 %1030  ;;  %vm4341_vm12 = vmmov %vm4339_vm6  ;;  %v2754_v9 = vsel %vm243_vm13, 1.0, %v3093_v16  ;;  %vm4273_vm6 = vcmp.lt.s32.totalorder %v3242_v61, 31  ;;  %v2801_v50 = vsel %vm780_vm11, 1.0, %v3093_v16  ;;  %vm4348_vm11 = vcmp.lt.s32.totalorder %v3242_v61, 33 }
  0xbf   : > { %2797 = vmatpush.msk.msrb.mxu3 %vm4341_vm12, %v270_v51  ;;  %2784 = vmatmul.msk.f32.vlgmr.msra.gmra.mxu0 %vm4342_vm7, %v3518_v60  ;;  %v4344_v51 = vmov 0  ;;  %vm4349_vm12 = vmmov %vm4348_vm11  ;;  %vm3629_vm13 = vcmp.lt.s32.totalorder %v164_v17, 31  ;;  %v4350_v56 = vmov 0  ;;  %vm3637_vm14 = vcmp.lt.s32.totalorder %v167_v54, 31  ;;  %v3645_v17 = vld [vmem:[%s4247_s1 + $0x10] sm:$0xff] }
  0xc0   : > { %2796 = vmatmul.msk.f32.vlgmr.msrb.gmra.mxu2 %vm4343_vm8, %v3518_v60  ;;  %2332 = vrot.lane.b32.xlu0 %v2313_v4, %s3095_s14  ;;  %v4345_v51 = vsel %vm3607_vm4, 4294967295, %v4344_v51  ;;  %vm3615_vm8 = vcmp.lt.s32.totalorder %v163_v7, 31  ;;  %v4351_v56 = vsel %vm3629_vm13, 4294967295, %v4350_v56  ;;  %v2314_v54 = vld.sshfl [vmem:[#allocation1 + $0x20] sm:$0xff pattern:$0x75316420] }
  0xc1   : > { %2326 = vrot.lane.b32.xlu1 %v2310_v35, %s3095_s14  ;;  %v4347_v48 = vsel %vm3615_vm8, 4294967295, %v4346_v48  ;;  %vm4357_vm3 = vcmask 31744  }
  0xc2   : > { %v223_v21 = vpop.permute.xlu0 %222  ;;  %v756_v63 = vpop.permute.xlu1 %755  ;;  %2798 = vmatmul.msk.f32.vlgmr.msrb.gmra.mxu3 %vm4342_vm7, %v3518_v60  ;;  %vm778_vm7 = vmand %vm3275_vm1, %vm3615_vm8 }
  0xc3   : > { %v233_v52 = vsel %vm4348_vm11, %v223_v21, %v225_v53  ;;  %v234_v5 = vsel %vm4349_vm12, %v3280_v13, %v223_v21  ;;  %v775_v46 = vsel %vm4273_vm6, %v756_v63, %v3388_v18  ;;  %v4352_v13 = vmov 0  ;;  %v2316_v53 = vld.sshfl [vmem:[#allocation1 + $0x30] sm:$0xff pattern:$0x75316420]  ;;  %vm779_vm6 = vmand %vm3269_vm0, %vm3629_vm13 }
  0xc4   : > { %v267_v7 = vmul.f32 %v2754_v9, %v234_v5  ;;  %v268_v57 = vmul.f32 %v2755_v3, %v233_v52  ;;  %v804_v4 = vmul.f32 %v2801_v50, %v775_v46  ;;  %v4353_v13 = vsel %vm3637_vm14, 4294967295, %v4352_v13  ;;  %2340 = vrot.lane.b32.xlu2 %v2317_v25, %s3095_s14  ;;  %vm782_vm1 = vmand %vm3382_vm9, %vm3637_vm14 }
  0xc5   : > { %vm4354_vm11 = vcmask 1043456   ;;  %vm4360_vm0 = vmand %vm3317_vm5, %vm3607_vm4  ;;  %v2799_v12 = vsel %vm778_vm7, 1.0, %v3093_v16  ;;  %v2800_v62 = vsel %vm779_vm6, 1.0, %v3093_v16  ;;  %vm3682_vm9 = vcmp.lt.s32.totalorder %v170_v49, 31 }
  0xc6   : > { %2791 = vmatpush.msk.msrb.mxu0 %vm4354_vm11, %v267_v7  ;;  %vm4355_vm12 = vmmov %vm4354_vm11  ;;  %v3657_v35 = vpop.permute.xlu2 %1040  ;;  %v2802_v11 = vsel %vm4360_vm0, 1.0, %v3093_v16  ;;  %v2803_v50 = vsel %vm782_vm1, 1.0, %v3093_v16  ;;  %vm3695_vm5 = vcmp.lt.s32.totalorder %v169_v23, 31  ;;  %v4365_v25 = vmov 0 }
  0xc7   : > { %2793 = vmatpush.msk.msrb.mxu1 %vm4355_vm12, %v268_v57  ;;  %vm4356_vm15 = vmmov %vm4354_vm11  ;;  %2792 = vmatmul.msk.f32.vlgmr.msrb.gmra.mxu0 %vm4357_vm3, %v3518_v60  ;;  %v4366_v25 = vsel %vm3695_vm5, 4294967295, %v4365_v25  ;;  %vm4367_vm6 = vcmp.lt.s32.totalorder %v3242_v61, 31 }
  0xc8   : > { %2812 = vmatpush.msk.msra.mxu2 %vm4356_vm15, %v804_v4  ;;  %vm4358_vm11 = vmmov %vm4357_vm3  ;;  %2334 = vrot.lane.b32.xlu0 %v2314_v54, %s3095_s14 }
  0xc9   : > { %2794 = vmatmul.msk.f32.vlgmr.msrb.gmra.mxu1 %vm4358_vm11, %v3518_v60  ;;  %vm4359_vm12 = vmmov %vm4357_vm3  ;;  %2338 = vrot.lane.b32.xlu1 %v2316_v53, %s3095_s14  ;;  %v4361_v60 = vmov 0  ;;  %vm3689_vm3 = vcmp.lt.s32.totalorder %v168_v45, 31  ;;  %vm4371_vm11 = vnez %v4310_v59 }
  0xca   : > { %2813 = vmatmul.msk.f32.vlgmr.msra.gmra.mxu2 %vm4359_vm12, %v3645_v17  ;;  %v4362_v60 = vsel %vm3682_vm9, 4294967295, %v4361_v60  ;;  %v760_v9 = vpop.permute.xlu1 %759  ;;  %v754_v3 = vpop.permute.xlu0 %753  ;;  %v4364_v0 = vsel %vm3689_vm3, 4294967295, %v4363_v0  ;;  %vm4368_vm15 = vmmov %vm4367_vm6 }
  0xcb   : > { %v774_v49 = vsel %vm4367_vm6, %v3388_v18, %v760_v9  ;;  %v776_v21 = vsel %vm4368_vm15, %v754_v3, %v756_v63  ;;  %vm4369_vm7 = vmmov %vm4367_vm6  ;;  %v2315_v63 = vld.sshfl [vmem:[#allocation1 + $0x28] sm:$0xff pattern:$0x75316420] }
  0xcc   : > { %v777_v45 = vsel %vm4369_vm7, %v3462_v47, %v754_v3  ;;  %vm4370_vm1 = vmmov %vm4367_vm6  ;;  %v805_v5 = vmul.f32 %v2802_v11, %v774_v49  ;;  %v803_v46 = vmul.f32 %v2800_v62, %v776_v21  ;;  %vm4372_vm6 = vcmask 1043456  }
  0xcd   : > { %v773_v52 = vsel %vm4370_vm1, %v760_v9, %v3537_v24  ;;  %v802_v23 = vmul.f32 %v2799_v12, %v777_v45  ;;  %vm785_vm12 = vmand %vm4371_vm11, %vm3682_vm9  ;;  %vm4374_vm7 = vnez %v4308_v58  ;;  %vm4376_vm11 = vcmask 31744  }
  0xce   : > { %v806_v18 = vmul.f32 %v2803_v50, %v773_v52  ;;  %vm783_vm0 = vmand %vm3394_vm10, %vm3689_vm3  ;;  %v3724_v7 = vpop.permute.xlu2 %1507  ;;  %v2806_v59 = vsel %vm785_vm12, 1.0, %v3093_v16 }
  0xcf   : > { %2808 = vmatpush.msk.msra.mxu0 %vm4372_vm6, %v802_v23  ;;  %vm4373_vm15 = vmmov %vm4372_vm6  ;;  %v2804_v58 = vsel %vm783_vm0, 1.0, %v3093_v16 }
  0xd0   : > { %2810 = vmatpush.msk.msra.mxu1 %vm4373_vm15, %v803_v46  ;;  %vm784_vm1 = vmand %vm4374_vm7, %vm3695_vm5  ;;  %2809 = vmatmul.msk.f32.vlgmr.msra.gmra.mxu0 %vm4376_vm11, %v3645_v17 }
  0xd1   : > { %vm4375_vm14 = vmmov %vm4372_vm6  ;;  %2336 = vrot.lane.b32.xlu0 %v2315_v63, %s3095_s14  ;;  %v2805_v22 = vsel %vm784_vm1, 1.0, %v3093_v16  ;;  %2816 = vmatpush.msk.msrb.mxu0 %vm4372_vm6, %v806_v18 }
  0xd2   : > { %2814 = vmatpush.msk.msra.mxu3 %vm4375_vm14, %v805_v5  ;;  %vm4377_vm9 = vmmov %vm4376_vm11  ;;  %v766_v57 = vpop.permute.xlu1 %765  ;;  %v764_v4 = vpop.permute.xlu0 %763  ;;  %vm4379_vm14 = vcmp.lt.s32.totalorder %v3242_v61, 31 }
  0xd3   : > { %2811 = vmatmul.msk.f32.vlgmr.msra.gmra.mxu1 %vm4377_vm9, %v3645_v17  ;;  %vm4378_vm10 = vmmov %vm4377_vm9  ;;  %v770_v54 = vsel %vm4379_vm14, %v766_v57, %v3462_v47 }
  0xd4   : > { %2815 = vmatmul.msk.f32.vlgmr.msra.gmra.mxu3 %vm4378_vm10, %v3645_v17  ;;  %vm4380_vm9 = vmmov %vm4379_vm14  ;;  %v809_v12 = vmul.f32 %v2806_v59, %v770_v54 }
  0xd5   : > { %v771_v53 = vsel %vm4380_vm9, %v764_v4, %v766_v57  ;;  %vm4381_vm15 = vmmov %vm4380_vm9  ;;  %vm4389_vm9 = vnez %v4320_v39 }
  0xd6   : > { %v772_v11 = vsel %vm4381_vm15, %v3537_v24, %v764_v4  ;;  %v808_v9 = vmul.f32 %v2805_v22, %v771_v53  ;;  %vm4382_vm12 = vmmov %vm4372_vm6  ;;  %v3751_v47 = vpop.permute.xlu2 %1505  ;;  %v2825_v24 = vsel %vm4389_vm9, 1.0, %v3093_v16  ;;  %vm4390_vm15 = vnez %v4316_v26 }
  0xd7   : > { %v807_v62 = vmul.f32 %v2804_v58, %v772_v11  ;;  %vm4383_vm0 = vmmov %vm4372_vm6  ;;  %vm4280_vm6 = vcmp.lt.s32.totalorder %v3242_v61, 1  ;;  %v2826_v3 = vsel %vm4390_vm15, 1.0, %v3093_v16  ;;  %vm4282_vm9 = vcmp.lt.s32.totalorder %v3242_v61, 127 }
  0xd8   : > { %2820 = vmatpush.msk.msrb.mxu2 %vm4383_vm0, %v808_v9  ;;  %vm4384_vm7 = vmmov %vm4383_vm0  ;;  %v2871_v26 = vsel %vm3689_vm3, 1.0, %v3093_v16 }
  0xd9   : > { %2818 = vmatpush.msk.msrb.mxu1 %vm4382_vm12, %v807_v62  ;;  %2822 = vmatpush.msk.msrb.mxu3 %vm4384_vm7, %v809_v12  ;;  %vm4385_vm1 = vmmov %vm4378_vm10 }
  0xda   : > { %2817 = vmatmul.msk.f32.vlgmr.msrb.gmra.mxu0 %vm4385_vm1, %v3645_v17  ;;  %vm4386_vm11 = vmmov %vm4385_vm1  ;;  %v1035_v50 = vpop.permute.xlu1 %1034  ;;  %v1033_v49 = vpop.permute.xlu0 %1032 }
  0xdb   : > { %2819 = vmatmul.msk.f32.vlgmr.msrb.gmra.mxu1 %vm4386_vm11, %v3645_v17  ;;  %vm4387_vm10 = vmmov %vm4385_vm1  ;;  %v1052_v21 = vsel %vm4280_vm6, %v1033_v49, %v1035_v50  ;;  %v1053_v45 = vsel %vm4280_vm6, %v3592_v2, %v1033_v49  ;;  %vm4393_vm11 = vnez %v4323_v14 }
  0xdc   : > { %2821 = vmatmul.msk.f32.vlgmr.msrb.gmra.mxu2 %vm4387_vm10, %v3645_v17  ;;  %vm4388_vm14 = vmmov %vm4385_vm1  ;;  %v1072_v52 = vmul.f32 %v2825_v24, %v1053_v45  ;;  %v1073_v5 = vmul.f32 %v2826_v3, %v1052_v21  ;;  %v2824_v23 = vsel %vm4393_vm11, 1.0, %v3093_v16  ;;  %vm4394_vm10 = vnez %v4318_v28 }
  0xdd   : > { %2823 = vmatmul.msk.f32.vlgmr.msrb.gmra.mxu3 %vm4388_vm14, %v3645_v17  ;;  %v2832_v17 = vld [vmem:[%s4247_s1 + $0x18] sm:$0xff]  ;;  %vm4391_vm12 = vmmov %vm4383_vm0  ;;  %v2827_v46 = vsel %vm4394_vm10, 1.0, %v3093_v16 }
  0xde   : > { %2835 = vmatpush.msk.msra.mxu1 %vm4391_vm12, %v1072_v52  ;;  %2837 = vmatpush.msk.msra.mxu2 %vm4383_vm0, %v1073_v5  ;;  %vm4392_vm7 = vmmov %vm4385_vm1  ;;  %v3784_v18 = vpop.permute.xlu2 %1517 }
  0xdf   : > { %vm4395_vm14 = vmmov %vm4383_vm0 }
  0xe0   : > { %vm4396_vm12 = vmmov %vm4383_vm0 }
  0xe1   : > { %vm4397_vm0 = vmmov %vm4385_vm1 }
  0xe2   : > { %v1045_v63 = vpop.permute.xlu1 %1044  ;;  %v1037_v59 = vpop.permute.xlu0 %1036 }
  0xe3   : > { %2836 = vmatmul.msk.f32.vlgmr.msra.gmra.mxu1 %vm4392_vm7, %v2832_v17  ;;  %v1054_v58 = vsel %vm4280_vm6, %v1045_v63, %v3592_v2  ;;  %v1051_v22 = vsel %vm4280_vm6, %v1035_v50, %v1037_v59  ;;  %vm4398_vm7 = vmmov %vm4397_vm0  ;;  %v2829_v2 = vsel %vm3559_vm2, 1.0, %v3093_v16  ;;  %vm4400_vm6 = vnez %v4327_v30 }
  0xe4   : > { %2838 = vmatmul.msk.f32.vlgmr.msra.gmra.mxu2 %vm4385_vm1, %v2832_v17  ;;  %v1071_v57 = vmul.f32 %v2824_v23, %v1054_v58  ;;  %v1074_v4 = vmul.f32 %v2827_v46, %v1051_v22  ;;  %vm4399_vm1 = vnez %v4330_v44  ;;  %v2830_v53 = vsel %vm4400_vm6, 1.0, %v3093_v16 }
  0xe5   : > { %v2828_v54 = vsel %vm4399_vm1, 1.0, %v3093_v16  ;;  %vm4406_vm6 = vcmask 1043456   ;;  %vm4410_vm1 = vcmask 31744   ;;  %v2872_v22 = vsel %vm3695_vm5, 1.0, %v3093_v16 }
  0xe6   : > { %2833 = vmatpush.msk.msra.mxu0 %vm4395_vm14, %v1071_v57  ;;  %2839 = vmatpush.msk.msra.mxu3 %vm4396_vm12, %v1074_v4  ;;  %vm4401_vm14 = vnez %v4325_v27  ;;  %vm4402_vm12 = vcmp.lt.s32.totalorder %v3242_v61, 1  ;;  %v3817_v49 = vpop.permute.xlu2 %1786  ;;  %vm4412_vm11 = vmmov %vm4410_vm1 }
  0xe7   : > { %2834 = vmatmul.msk.f32.vlgmr.msra.gmra.mxu0 %vm4397_vm0, %v2832_v17  ;;  %2840 = vmatmul.msk.f32.vlgmr.msra.gmra.mxu3 %vm4398_vm7, %v2832_v17  ;;  %v2831_v11 = vsel %vm4401_vm14, 1.0, %v3093_v16  ;;  %vm4403_vm0 = vmmov %vm4402_vm12 }
  0xe8   : > { %vm4404_vm7 = vmmov %vm4403_vm0 }
  0xe9   : > { %vm4405_vm2 = vmmov %vm4403_vm0 }
  0xea   : > { %v1039_v12 = vpop.permute.xlu1 %1038  ;;  %v1043_v62 = vpop.permute.xlu0 %1042  ;;  %vm4407_vm14 = vmmov %vm4406_vm6 }
  0xeb   : > { %v1049_v9 = vsel %vm4402_vm12, %v1039_v12, %v3657_v35  ;;  %v1050_v24 = vsel %vm4403_vm0, %v1037_v59, %v1039_v12  ;;  %v1047_v3 = vsel %vm4404_vm7, %v1043_v62, %v1045_v63  ;;  %v1048_v50 = vsel %vm4405_vm2, %v3657_v35, %v1043_v62  ;;  %vm4408_vm12 = vmmov %vm4406_vm6 }
  0xec   : > { %v1075_v21 = vmul.f32 %v2828_v54, %v1050_v24  ;;  %v1076_v45 = vmul.f32 %v2829_v2, %v1049_v9  ;;  %v1077_v52 = vmul.f32 %v2830_v53, %v1048_v50  ;;  %v1078_v5 = vmul.f32 %v2831_v11, %v1047_v3  ;;  %vm4409_vm0 = vmmov %vm4406_vm6 }
  0xed   : > { %vm4411_vm7 = vmmov %vm4410_vm1  ;;  %v4441_v9 = vmov 0  ;;  %v4443_v24 = vshra.s32 %v3242_v61, 5 }
  0xee   : > { %2841 = vmatpush.msk.msrb.mxu0 %vm4406_vm6, %v1075_v21  ;;  %2843 = vmatpush.msk.msrb.mxu1 %vm4407_vm14, %v1076_v45  ;;  %vm4413_vm2 = vmmov %vm4410_vm1 }
  0xef   : > { %2845 = vmatpush.msk.msrb.mxu2 %vm4408_vm12, %v1077_v52  ;;  %2847 = vmatpush.msk.msrb.mxu3 %vm4409_vm0, %v1078_v5  ;;  %vm4414_vm6 = vmmov %vm4409_vm0  ;;  %vm4416_vm12 = vnez %v4338_v55  ;;  %v4448_v5 = vshra.s32 %v3332_v32, 5 }
  0xf0   : > { %2842 = vmatmul.msk.f32.vlgmr.msrb.gmra.mxu0 %vm4410_vm1, %v2832_v17  ;;  %2844 = vmatmul.msk.f32.vlgmr.msrb.gmra.mxu1 %vm4411_vm7, %v2832_v17  ;;  %vm4415_vm14 = vmmov %vm4409_vm0  ;;  %v2868_v46 = vsel %vm4416_vm12, 1.0, %v3093_v16 }
  0xf1   : > { %2846 = vmatmul.msk.f32.vlgmr.msrb.gmra.mxu2 %vm4412_vm11, %v2832_v17  ;;  %2848 = vmatmul.msk.f32.vlgmr.msrb.gmra.mxu3 %vm4413_vm2, %v2832_v17  ;;  %vm4417_vm11 = vmmov %vm4409_vm0  ;;  %v2849_v17 = vld [vmem:[%s4247_s1 + $0x20] sm:$0xff] }
  0xf2   : > { %v1510_v35 = vpop.permute.xlu0 %1509  ;;  %v1504_v23 = vpop.permute.xlu1 %1503  ;;  %2852 = vmatpush.msk.msra.mxu1 %vm4414_vm6, %v3206_v38  ;;  %2854 = vmatpush.msk.msra.mxu2 %vm4415_vm14, %v3198_v33  ;;  %vm4418_vm1 = vmmov %vm4409_vm0  ;;  %v2866_v38 = vsel %vm3615_vm8, 1.0, %v3093_v16  ;;  %vm4422_vm14 = vcmask 31744   ;;  %vm4456_vm8 = vcmask 31744  }
  0xf3   : > { %v1524_v63 = vsel %vm4282_vm9, %v3724_v7, %v1510_v35  ;;  %2850 = vmatpush.msk.msra.mxu0 %vm4417_vm11, %v3203_v37  ;;  %2856 = vmatpush.msk.msra.mxu3 %vm4418_vm1, %v3200_v34  ;;  %v1526_v33 = vsel %vm4282_vm9, %v1504_v23, %v3751_v47  ;;  %vm4419_vm7 = vmmov %vm4409_vm0  ;;  %v2867_v37 = vsel %vm3629_vm13, 1.0, %v3093_v16  ;;  %v1525_v34 = vsel %vm4282_vm9, %v3751_v47, %v3724_v7 }
  0xf4   : > { %2860 = vmatpush.msk.msrb.mxu1 %vm4409_vm0, %v3217_v43  ;;  %2862 = vmatpush.msk.msrb.mxu2 %vm4419_vm7, %v3210_v40  ;;  %vm4420_vm2 = vmmov %vm4409_vm0  ;;  %v3866_v40 = vpop.permute.xlu2 %1788  ;;  %v1546_v43 = vmul.f32 %v2868_v46, %v1524_v63  ;;  %v1544_v59 = vmul.f32 %v2866_v38, %v1526_v33  ;;  %v1545_v58 = vmul.f32 %v2867_v37, %v1525_v34  ;;  %v4461_v63 = vmov 0 }
  0xf5   : > { %2858 = vmatpush.msk.msrb.mxu0 %vm4420_vm2, %v3215_v42  ;;  %vm4421_vm6 = vmmov %vm4409_vm0  ;;  %v2869_v42 = vsel %vm3607_vm4, 1.0, %v3093_v16  ;;  %v1527_v11 = vsel %vm4282_vm9, %v3784_v18, %v1504_v23  ;;  %v2874_v23 = vld [vmem:[%s4247_s1 + $0x28] sm:$0xff]  ;;  %v4465_v34 = vshra.s32 %v3337_v36, 5  ;;  %vm4479_vm13 = vcmask 31744  }
  0xf6   : > { %2864 = vmatpush.msk.msrb.mxu3 %vm4421_vm6, %v3212_v41  ;;  %vm4423_vm11 = vmmov %vm4422_vm14 }
  0xf7   : > { %vm4424_vm1 = vmmov %vm4423_vm11 }
  0xf8   : > { %2851 = vmatmul.msk.f32.vlgmr.msra.gmra.mxu0 %vm4422_vm14, %v2849_v17  ;;  %2853 = vmatmul.msk.f32.vlgmr.msra.gmra.mxu1 %vm4423_vm11, %v2849_v17  ;;  %vm4425_vm0 = vmmov %vm4424_vm1  ;;  %vm3888_vm14 = vcmp.lt.s32.totalorder %v157_v19, 31  ;;  %vm3894_vm11 = vcmp.lt.s32.totalorder %v158_v20, 31 }
  0xf9   : > { %2855 = vmatmul.msk.f32.vlgmr.msra.gmra.mxu2 %vm4424_vm1, %v2849_v17  ;;  %2857 = vmatmul.msk.f32.vlgmr.msra.gmra.mxu3 %vm4425_vm0, %v2849_v17  ;;  %vm4426_vm7 = vmmov %vm4420_vm2  ;;  %vm4432_vm1 = vnez %v4362_v60 }
  0xfa   : > { %2877 = vmatpush.msk.msra.mxu1 %vm4426_vm7, %v1545_v58  ;;  %2879 = vmatpush.msk.msra.mxu2 %vm4420_vm2, %v1546_v43  ;;  %v1512_v41 = vpop.permute.xlu0 %1511  ;;  %v1516_v7 = vpop.permute.xlu1 %1515  ;;  %vm4427_vm6 = vmmov %vm4420_vm2  ;;  %v2873_v53 = vsel %vm4432_vm1, 1.0, %v3093_v16  ;;  %v4471_v58 = vshra.s32 %v3306_v29, 5 }
  0xfb   : > { %v1523_v47 = vsel %vm4282_vm9, %v1510_v35, %v1512_v41  ;;  %v1520_v57 = vsel %vm4282_vm9, %v1516_v7, %v3784_v18  ;;  %2875 = vmatpush.msk.msra.mxu0 %vm4427_vm6, %v1544_v59  ;;  %vm4433_vm0 = vmmov %vm4420_vm2  ;;  %v1551_v19 = vmul.f32 %v2873_v53, %v1527_v11  ;;  %vm4434_vm6 = vcmask 31744  }
  0xfc   : > { %v1547_v54 = vmul.f32 %v2869_v42, %v1523_v47  ;;  %v1550_v1 = vmul.f32 %v2872_v22, %v1520_v57  ;;  %vm1807_vm7 = vmand %vm3888_vm14, %vm4390_vm15  ;;  %v3913_v10 = vpop.permute.xlu2 %1790  ;;  %vm4284_vm9 = vcmp.lt.s32.totalorder %v3242_v61, 97  ;;  %vm4438_vm15 = vnez %v4353_v13 }
  0xfd   : > { %vm1808_vm2 = vmand %vm3894_vm11, %vm4394_vm10  ;;  %v2870_v20 = vsel %vm4438_vm15, 1.0, %v3093_v16  ;;  %vm4439_vm10 = vcmask 1043456   ;;  %v2893_v18 = vsel %vm1807_vm7, 1.0, %v3093_v16  ;;  %v4449_v35 = vmov 0 }
  0xfe   : > { %2881 = vmatpush.msk.msra.mxu3 %vm4433_vm0, %v1547_v54  ;;  %vm4435_vm1 = vmmov %vm4434_vm6  ;;  %v2894_v62 = vsel %vm1808_vm2, 1.0, %v3093_v16  ;;  %vm3955_vm2 = vcmp.lt.s32.totalorder %v4448_v5, 31  ;;  %vm4455_vm15 = vnez %v4330_v44 }
  0xff   : > { %vm4436_vm0 = vmmov %vm4435_vm1  ;;  %v4450_v35 = vsel %vm3955_vm2, 4294967295, %v4449_v35 }
 0x100   : > { %2859 = vmatmul.msk.f32.vlgmr.msrb.gmra.mxu0 %vm4434_vm6, %v2849_v17  ;;  %2861 = vmatmul.msk.f32.vlgmr.msrb.gmra.mxu1 %vm4435_vm1, %v2849_v17  ;;  %vm4437_vm5 = vmmov %vm4436_vm0  ;;  %vm3938_vm6 = vcmp.lt.s32.totalorder %v4443_v24, 31 }
 0x101   : > { %2863 = vmatmul.msk.f32.vlgmr.msrb.gmra.mxu2 %vm4436_vm0, %v2849_v17  ;;  %2865 = vmatmul.msk.f32.vlgmr.msrb.gmra.mxu3 %vm4437_vm5, %v2849_v17  ;;  %vm4440_vm1 = vmmov %vm4439_vm10  ;;  %vm3932_vm5 = vcmp.lt.s32.totalorder %v156_v8, 31  ;;  %vm4446_vm0 = vcmp.lt.s32.totalorder %v3242_v61, 127  ;;  %v1800_v8 = vsel %vm4284_vm9, %v3817_v49, %v3866_v40  ;;  %v4466_v17 = vmov 0 }
 0x102   : > { %2889 = vmatpush.msk.msrb.mxu3 %vm4439_vm10, %v1551_v19  ;;  %v1514_v28 = vpop.permute.xlu0 %1513  ;;  %v1785_v12 = vpop.permute.xlu1 %1784  ;;  %2887 = vmatpush.msk.msrb.mxu2 %vm4440_vm1, %v1550_v1  ;;  %v4442_v9 = vsel %vm3932_vm5, 4294967295, %v4441_v9  ;;  %vm4447_vm7 = vmmov %vm4446_vm0  ;;  %vm4451_vm10 = vnez %v4320_v39  ;;  %v2899_v19 = vld [vmem:[%s4247_s1 + $0x30] sm:$0xff]  ;;  %v2916_v24 = vsel %vm3938_vm6, 1.0, %v3093_v16 }
 0x103   : > { %v1521_v50 = vsel %vm4446_vm0, %v1514_v28, %v1516_v7  ;;  %v1522_v21 = vsel %vm4447_vm7, %v1512_v41, %v1514_v28  ;;  %v1801_v6 = vsel %vm4284_vm9, %v1785_v12, %v3817_v49  ;;  %vm1806_vm1 = vmand %vm3932_vm5, %vm4451_vm10  ;;  %vm4452_vm0 = vcmask 1043456  }
 0x104   : > { %v1548_v45 = vmul.f32 %v2870_v20, %v1522_v21  ;;  %v1549_v52 = vmul.f32 %v2871_v26, %v1521_v50  ;;  %v1831_v46 = vmul.f32 %v2893_v18, %v1801_v6  ;;  %vm4453_vm7 = vmmov %vm4452_vm0  ;;  %v1832_v49 = vmul.f32 %v2894_v62, %v1800_v8  ;;  %v3988_v44 = vpop.permute.xlu2 %2057 }
 0x105   : > { %vm4454_vm9 = vnez %v4323_v14  ;;  %vm1809_vm4 = vmand %vm3955_vm2, %vm4455_vm15  ;;  %v2892_v32 = vsel %vm1806_vm1, 1.0, %v3093_v16  ;;  %v4460_v14 = vshra.s32 %v3329_v31, 5  ;;  %vm3995_vm15 = vcmp.lt.s32.totalorder %v4465_v34, 31 }
 0x106   : > { %2883 = vmatpush.msk.msrb.mxu0 %vm4452_vm0, %v1548_v45  ;;  %2885 = vmatpush.msk.msrb.mxu1 %vm4453_vm7, %v1549_v52  ;;  %vm1805_vm3 = vmand %vm3938_vm6, %vm4454_vm9  ;;  %v2895_v37 = vsel %vm1809_vm4, 1.0, %v3093_v16  ;;  %v4467_v17 = vsel %vm3995_vm15, 4294967295, %v4466_v17  ;;  %vm4009_vm4 = vcmp.lt.s32.totalorder %v4471_v58, 31  ;;  %v2919_v62 = vsel %vm3894_vm11, 1.0, %v3093_v16 }
 0x107   : > { %vm4457_vm12 = vmmov %vm4456_vm8  ;;  %v2891_v39 = vsel %vm1805_vm3, 1.0, %v3093_v16  ;;  %vm3984_vm9 = vcmp.lt.s32.totalorder %v4460_v14, 31  ;;  %vm4468_vm3 = vcmp.lt.s32.totalorder %v3242_v61, 97 }
 0x108   : > { %2876 = vmatmul.msk.f32.vlgmr.msra.gmra.mxu0 %vm4456_vm8, %v2874_v23  ;;  %2878 = vmatmul.msk.f32.vlgmr.msra.gmra.mxu1 %vm4457_vm12, %v2874_v23  ;;  %vm4458_vm10 = vmmov %vm4456_vm8  ;;  %v4462_v63 = vsel %vm3984_vm9, 4294967295, %v4461_v63 }
 0x109   : > { %2880 = vmatmul.msk.f32.vlgmr.msra.gmra.mxu2 %vm4458_vm10, %v2874_v23  ;;  %vm4459_vm0 = vmmov %vm4456_vm8  ;;  %vm4474_vm10 = vnez %v4325_v27 }
 0x10a   : > { %2882 = vmatmul.msk.f32.vlgmr.msra.gmra.mxu3 %vm4459_vm0, %v2874_v23  ;;  %v1783_v38 = vpop.permute.xlu1 %1782  ;;  %v1781_v33 = vpop.permute.xlu0 %1780  ;;  %vm4463_vm8 = vmmov %vm4453_vm7 }
 0x10b   : > { %2904 = vmatpush.msk.msra.mxu2 %vm4463_vm8, %v1831_v46  ;;  %vm4464_vm12 = vmmov %vm4453_vm7  ;;  %v1802_v31 = vsel %vm4468_vm3, %v1783_v38, %v1785_v12  ;;  %vm4475_vm8 = vnez %v4333_v15 }
 0x10c   : > { %2906 = vmatpush.msk.msra.mxu3 %vm4464_vm12, %v1832_v49  ;;  %vm4469_vm1 = vmmov %vm4468_vm3  ;;  %v1830_v36 = vmul.f32 %v2892_v32, %v1802_v31  ;;  %vm4476_vm3 = vcmask 1043456   ;;  %v2070_v1 = vpop.permute.xlu2 %2069  ;;  %v2924_v49 = vld [vmem:[%s4247_s1 + $0x38] sm:$0xff] }
 0x10d   : > { %v1803_v43 = vsel %vm4469_vm1, %v1781_v33, %v1783_v38  ;;  %vm4470_vm7 = vmmov %vm4469_vm1 }
 0x10e   : > { %v1799_v59 = vsel %vm4470_vm7, %v3866_v40, %v3913_v10  ;;  %v1829_v41 = vmul.f32 %v2891_v39, %v1803_v43  ;;  %vm1812_vm0 = vmand %vm3984_vm9, %vm4474_vm10  ;;  %vm4478_vm7 = vnez %v4327_v30 }
 0x10f   : > { %vm1810_vm12 = vmand %vm3995_vm15, %vm4475_vm8  ;;  %v1833_v29 = vmul.f32 %v2895_v37, %v1799_v59  ;;  %v2898_v27 = vsel %vm1812_vm0, 1.0, %v3093_v16 }
 0x110   : > { %2900 = vmatpush.msk.msra.mxu0 %vm4476_vm3, %v1829_v41  ;;  %vm4477_vm1 = vmmov %vm4476_vm3  ;;  %v2896_v15 = vsel %vm1810_vm12, 1.0, %v3093_v16  ;;  %vm4484_vm3 = vcmp.lt.s32.totalorder %v3242_v61, 97 }
 0x111   : > { %2902 = vmatpush.msk.msra.mxu1 %vm4477_vm1, %v1830_v36  ;;  %vm1811_vm2 = vmand %vm4009_vm4, %vm4478_vm7  ;;  %2884 = vmatmul.msk.f32.vlgmr.msrb.gmra.mxu0 %vm4479_vm13, %v2874_v23  ;;  %vm2073_vm7 = vcmp.lt.s32.totalorder %v3242_v61, 96 }
 0x112   : > { %vm4480_vm5 = vmmov %vm4479_vm13  ;;  %v2897_v40 = vsel %vm1811_vm2, 1.0, %v3093_v16  ;;  %v1795_v7 = vpop.permute.xlu1 %1794  ;;  %v1793_v47 = vpop.permute.xlu0 %1792 }
 0x113   : > { %2886 = vmatmul.msk.f32.vlgmr.msrb.gmra.mxu1 %vm4480_vm5, %v2874_v23  ;;  %vm4481_vm10 = vmmov %vm4480_vm5  ;;  %v1804_v30 = vsel %vm4484_vm3, %v1795_v7, %v1781_v33  ;;  %v2921_v33 = vsel %vm3995_vm15, 1.0, %v3093_v16 }
 0x114   : > { %2888 = vmatmul.msk.f32.vlgmr.msrb.gmra.mxu2 %vm4481_vm10, %v2874_v23  ;;  %vm4482_vm9 = vmmov %vm4480_vm5  ;;  %v1836_v54 = vmul.f32 %v2898_v27, %v1804_v30  ;;  %v4059_v12 = vpop.permute.xlu2 %2330 }
 0x115   : > { %2890 = vmatmul.msk.f32.vlgmr.msrb.gmra.mxu3 %vm4482_vm9, %v2874_v23  ;;  %vm4483_vm8 = vmmov %vm4477_vm1 }
 0x116   : > { %2908 = vmatpush.msk.msrb.mxu0 %vm4483_vm8, %v1833_v29  ;;  %vm4485_vm13 = vmmov %vm4484_vm3 }
 0x117   : > { %v1797_v22 = vsel %vm4485_vm13, %v1793_v47, %v1795_v7  ;;  %vm4486_vm5 = vmmov %vm4484_vm3 }
 0x118   : > { %v1798_v57 = vsel %vm4486_vm5, %v3913_v10, %v1793_v47  ;;  %v1835_v11 = vmul.f32 %v2897_v40, %v1797_v22  ;;  %vm4487_vm2 = vmmov %vm4477_vm1  ;;  %v2918_v10 = vsel %vm3888_vm14, 1.0, %v3093_v16 }
 0x119   : > { %v1834_v53 = vmul.f32 %v2896_v15, %v1798_v57  ;;  %vm4488_vm9 = vmmov %vm4477_vm1 }
 0x11a   : > { %2912 = vmatpush.msk.msrb.mxu2 %vm4488_vm9, %v1835_v11  ;;  %vm4489_vm0 = vmmov %vm4477_vm1  ;;  %v2064_v20 = vpop.permute.xlu1 %2063  ;;  %v2062_v26 = vpop.permute.xlu0 %2061 }
 0x11b   : > { %2910 = vmatpush.msk.msrb.mxu1 %vm4487_vm2, %v1834_v53  ;;  %2914 = vmatpush.msk.msrb.mxu3 %vm4489_vm0, %v1836_v54  ;;  %vm4490_vm12 = vmmov %vm4481_vm10  ;;  %v2078_v28 = vsel %vm2073_vm7, %v2062_v26, %v2064_v20 }
 0x11c   : > { %2901 = vmatmul.msk.f32.vlgmr.msra.gmra.mxu0 %vm4490_vm12, %v2899_v19  ;;  %vm4491_vm1 = vmmov %vm4481_vm10  ;;  %v2100_v18 = vmul.f32 %v2918_v10, %v2078_v28  ;;  %v412_v32 = vpop.f32.mrf.mxu1  ;;  %v4089_v39 = vpop.f32.mrf.mxu0 }
 0x11d   : > { %2903 = vmatmul.msk.f32.vlgmr.msra.gmra.mxu1 %vm4491_vm1, %v2899_v19  ;;  %vm4492_vm10 = vmmov %vm4491_vm1  ;;  %v2329_v14 = vpop.permute.xlu2 %2328 }
 0x11e   : > { %2905 = vmatmul.msk.f32.vlgmr.msra.gmra.mxu2 %vm4492_vm10, %v2899_v19  ;;  %vm4493_vm8 = vmmov %vm4491_vm1 }
 0x11f   : > { %2907 = vmatmul.msk.f32.vlgmr.msra.gmra.mxu3 %vm4493_vm8, %v2899_v19  ;;  %vm4494_vm3 = vmmov %vm4489_vm0  ;;  %vm4499_vm0 = vnez %v4442_v9 }
 0x120   : > { %2929 = vmatpush.msk.msra.mxu2 %vm4494_vm3, %v2100_v18  ;;  %vm4495_vm13 = vmmov %vm4491_vm1  ;;  %v2917_v50 = vsel %vm4499_vm0, 1.0, %v3093_v16 }
 0x121   : > { %vm4496_vm5 = vmmov %vm4491_vm1 }
 0x122   : > { %vm4497_vm2 = vmmov %vm4491_vm1  ;;  %v2066_v21 = vpop.permute.xlu1 %2065  ;;  %v2060_v6 = vpop.permute.xlu0 %2059 }
 0x123   : > { %vm4498_vm9 = vmmov %vm4491_vm1  ;;  %v2077_v8 = vsel %vm2073_vm7, %v2064_v20, %v2066_v21  ;;  %v2079_v45 = vsel %vm2073_vm7, %v2060_v6, %v2062_v26  ;;  %v2080_v52 = vsel %vm2073_vm7, %v3988_v44, %v2060_v6 }
 0x124   : > { %2909 = vmatmul.msk.f32.vlgmr.msrb.gmra.mxu0 %vm4495_vm13, %v2899_v19  ;;  %v2101_v5 = vmul.f32 %v2919_v62, %v2077_v8  ;;  %v2098_v23 = vmul.f32 %v2916_v24, %v2080_v52  ;;  %v2099_v46 = vmul.f32 %v2917_v50, %v2079_v45  ;;  %vm4500_vm12 = vmmov %vm4494_vm3  ;;  %vm4295_vm13 = vcmp.lt.s32.totalorder %v3242_v61, 95 }
 0x125   : > { %2911 = vmatmul.msk.f32.vlgmr.msrb.gmra.mxu1 %vm4496_vm5, %v2899_v19  ;;  %vm4501_vm1 = vmmov %vm4494_vm3  ;;  %vm4505_vm5 = vnez %v4351_v56  ;;  %v2922_v56 = vsel %vm4009_vm4, 1.0, %v3093_v16  ;;  %v2348_v36 = vsel %vm4295_vm13, %v2329_v14, %v4059_v12 }
 0x126   : > { %2913 = vmatmul.msk.f32.vlgmr.msrb.gmra.mxu2 %vm4497_vm2, %v2899_v19  ;;  %2925 = vmatpush.msk.msra.mxu0 %vm4500_vm12, %v2098_v23  ;;  %vm4502_vm10 = vmmov %vm4501_vm1 }
 0x127   : > { %2915 = vmatmul.msk.f32.vlgmr.msrb.gmra.mxu3 %vm4498_vm9, %v2899_v19  ;;  %2927 = vmatpush.msk.msra.mxu1 %vm4501_vm1, %v2099_v46  ;;  %vm4503_vm8 = vmmov %vm4497_vm2  ;;  %vm4508_vm1 = vnez %v4450_v35  ;;  %v2949_v19 = vld [vmem:[%s4247_s1 + $0x40] sm:$0xff] }
 0x128   : > { %2931 = vmatpush.msk.msra.mxu3 %vm4502_vm10, %v2101_v5  ;;  %vm4504_vm3 = vmmov %vm4497_vm2  ;;  %v2920_v38 = vsel %vm4508_vm1, 1.0, %v3093_v16 }
 0x129   : > { %vm2352_vm2 = vmand %vm4499_vm0, %vm4505_vm5  ;;  %vm4509_vm0 = vnez %v4462_v63 }
 0x12a   : > { %vm4506_vm9 = vmmov %vm4504_vm3  ;;  %v432_v37 = vpop.f32.mrf.mxu2  ;;  %v2068_v34 = vpop.permute.xlu1 %2067  ;;  %v2923_v9 = vsel %vm4509_vm0, 1.0, %v3093_v16  ;;  %v2942_v58 = vsel %vm2352_vm2, 1.0, %v3093_v16 }
 0x12b   : > { %vm4507_vm12 = vmmov %vm4504_vm3  ;;  %v2075_v31 = vsel %vm2073_vm7, %v2068_v34, %v2070_v1  ;;  %v2076_v43 = vsel %vm2073_vm7, %v2066_v21, %v2068_v34  ;;  %v2072_v59 = vpop.permute.xlu0 %2071  ;;  %v452_v41 = vpop.f32.mrf.mxu3  ;;  %v2376_v30 = vmul.f32 %v2942_v58, %v2348_v36 }
 0x12c   : > { %2926 = vmatmul.msk.f32.vlgmr.msra.gmra.mxu0 %vm4503_vm8, %v2924_v49  ;;  %v2102_v29 = vmul.f32 %v2920_v38, %v2076_v43  ;;  %v2103_v27 = vmul.f32 %v2921_v33, %v2075_v31  ;;  %v2074_v15 = vsel %vm2073_vm7, %v2070_v1, %v2072_v59  ;;  %v2081_v40 = vsel %vm2073_vm7, %v2072_v59, %v3988_v44  ;;  %vm4510_vm8 = vmmov %vm4502_vm10 }
 0x12d   : > { %2928 = vmatmul.msk.f32.vlgmr.msra.gmra.mxu1 %vm4504_vm3, %v2924_v49  ;;  %v2104_v7 = vmul.f32 %v2922_v56, %v2074_v15  ;;  %v2105_v47 = vmul.f32 %v2923_v9, %v2081_v40  ;;  %vm4511_vm3 = vnez %v4338_v55  ;;  %vm4512_vm2 = vmmov %vm4510_vm8 }
 0x12e   : > { %2930 = vmatmul.msk.f32.vlgmr.msra.gmra.mxu2 %vm4506_vm9, %v2924_v49  ;;  %2933 = vmatpush.msk.msrb.mxu0 %vm4502_vm10, %v2102_v29  ;;  %vm2353_vm5 = vmand %vm3888_vm14, %vm4511_vm3  ;;  %vm4515_vm10 = vcmask 31744   ;;  %v472_v57 = vpop.f32.mrf.mxu0 }
 0x12f   : > { %2932 = vmatmul.msk.f32.vlgmr.msra.gmra.mxu3 %vm4507_vm12, %v2924_v49  ;;  %2935 = vmatpush.msk.msrb.mxu1 %vm4510_vm8, %v2103_v27  ;;  %vm4513_vm9 = vmmov %vm4512_vm2  ;;  %vm4514_vm12 = vnez %v4347_v48  ;;  %v4135_v44 = vpop.f32.mrf.mxu1  ;;  %v2943_v4 = vsel %vm2353_vm5, 1.0, %v3093_v16 }
 0x130   : > { %2937 = vmatpush.msk.msrb.mxu2 %vm4512_vm2, %v2104_v7  ;;  %2939 = vmatpush.msk.msrb.mxu3 %vm4513_vm9, %v2105_v47  ;;  %vm2351_vm7 = vmand %vm3938_vm6, %vm4514_vm12  ;;  %vm4520_vm6 = vcmp.lt.s32.totalorder %v3242_v61, 95  ;;  %vm4524_vm9 = vnez %v4366_v25 }
 0x131   : > { %vm4516_vm8 = vmmov %vm4515_vm10  ;;  %v2941_v22 = vsel %vm2351_vm7, 1.0, %v3093_v16 }
 0x132   : > { %vm4517_vm13 = vmmov %vm4516_vm8  ;;  %v512_v55 = vpop.f32.mrf.mxu2 }
 0x133   : > { %vm4518_vm15 = vmmov %vm4516_vm8  ;;  %v2333_v48 = vpop.permute.xlu0 %2332  ;;  %v2327_v3 = vpop.permute.xlu1 %2326 }
 0x134   : > { %2934 = vmatmul.msk.f32.vlgmr.msrb.gmra.mxu0 %vm4515_vm10, %v2924_v49  ;;  %vm4519_vm14 = vmmov %vm4512_vm2  ;;  %v2347_v54 = vsel %vm4520_vm6, %v4059_v12, %v2333_v48 }
 0x135   : > { %2936 = vmatmul.msk.f32.vlgmr.msrb.gmra.mxu1 %vm4516_vm8, %v2924_v49  ;;  %vm4521_vm3 = vmmov %vm4520_vm6  ;;  %v2377_v11 = vmul.f32 %v2943_v4, %v2347_v54  ;;  %v532_v10 = vpop.f32.mrf.mxu3 }
 0x136   : > { %2938 = vmatmul.msk.f32.vlgmr.msrb.gmra.mxu2 %vm4517_vm13, %v2924_v49  ;;  %2952 = vmatpush.msk.msra.mxu1 %vm4519_vm14, %v2376_v30  ;;  %v2349_v53 = vsel %vm4521_vm3, %v2327_v3, %v2329_v14  ;;  %vm4523_vm5 = vmmov %vm4512_vm2  ;;  %vm4528_vm14 = vnez %v4362_v60 }
 0x137   : > { %2940 = vmatmul.msk.f32.vlgmr.msrb.gmra.mxu3 %vm4518_vm15, %v2924_v49  ;;  %v2375_v1 = vmul.f32 %v2941_v22, %v2349_v53  ;;  %vm4522_vm15 = vnez %v4345_v51  ;;  %2954 = vmatpush.msk.msra.mxu2 %vm4512_vm2, %v2377_v11  ;;  %vm2357_vm12 = vmand %vm4009_vm4, %vm4524_vm9  ;;  %v599_v20 = vpop.f32.mrf.mxu1  ;;  %v2341_v51 = vpop.permute.xlu2 %2340  ;;  %vm4535_vm9 = vnez %v4467_v17 }
 0x138   : > { %vm2354_vm13 = vmand %vm3894_vm11, %vm4522_vm15  ;;  %v600_v26 = vadd.f32 %v599_v20, %v412_v32  ;;  %v2947_v42 = vsel %vm2357_vm12, 1.0, %v3093_v16 }
 0x139   : > { %2950 = vmatpush.msk.msra.mxu0 %vm4523_vm5, %v2375_v1  ;;  %vm4525_vm7 = vmmov %vm4516_vm8  ;;  %v2944_v25 = vsel %vm2354_vm13, 1.0, %v3093_v16 }
 0x13a   : > { %vm4526_vm10 = vmmov %vm4525_vm7  ;;  %v619_v2 = vpop.f32.mrf.mxu2 }
 0x13b   : > { %vm4527_vm8 = vmmov %vm4525_vm7  ;;  %v620_v28 = vadd.f32 %v619_v2, %v432_v37  ;;  %v2335_v18 = vpop.permute.xlu0 %2334  ;;  %v2339_v12 = vpop.permute.xlu1 %2338 }
 0x13c   : > { %2951 = vmatmul.msk.f32.vlgmr.msra.gmra.mxu0 %vm4525_vm7, %v2949_v19  ;;  %vm2358_vm11 = vmand %vm4509_vm0, %vm4528_vm14  ;;  %v2343_v63 = vsel %vm4521_vm3, %v2339_v12, %v2341_v51  ;;  %v579_v50 = vpop.f32.mrf.mxu0  ;;  %vm4531_vm0 = vnez %v4353_v13 }
 0x13d   : > { %2953 = vmatmul.msk.f32.vlgmr.msra.gmra.mxu1 %vm4526_vm10, %v2949_v19  ;;  %v2948_v62 = vsel %vm2358_vm11, 1.0, %v3093_v16  ;;  %vm4529_vm4 = vmmov %vm4521_vm3  ;;  %v2381_v6 = vmul.f32 %v2947_v42, %v2343_v63  ;;  %v580_v8 = vadd.f32 %v579_v50, %v4089_v39  ;;  %v639_v45 = vpop.f32.mrf.mxu3 }
 0x13e   : > { %2955 = vmatmul.msk.f32.vlgmr.msra.gmra.mxu2 %vm4527_vm8, %v2949_v19  ;;  %v2350_v24 = vsel %vm4529_vm4, %v2341_v51, %v2327_v3  ;;  %vm4530_vm6 = vmmov %vm4521_vm3  ;;  %v640_v52 = vadd.f32 %v639_v45, %v452_v41 }
 0x13f   : > { %v2346_v60 = vsel %vm4530_vm6, %v2333_v48, %v2335_v18  ;;  %vm2355_vm15 = vmand %vm4508_vm1, %vm4531_vm0  ;;  %v2382_v5 = vmul.f32 %v2948_v62, %v2350_v24 }
 0x140   : > { %v2378_v21 = vmul.f32 %v2944_v25, %v2346_v60  ;;  %vm4532_vm13 = vmmov %vm4512_vm2  ;;  %v2945_v13 = vsel %vm2355_vm15, 1.0, %v3093_v16 }
 0x141   : > { %vm4533_vm5 = vmmov %vm4512_vm2  ;;  %vm4534_vm2 = vnez %v4364_v0 }
 0x142   : > { %2956 = vmatpush.msk.msra.mxu3 %vm4532_vm13, %v2378_v21  ;;  %2962 = vmatpush.msk.msrb.mxu2 %vm4533_vm5, %v2381_v6  ;;  %vm2356_vm12 = vmand %vm4535_vm9, %vm4534_vm2 }
 0x143   : > { %2957 = vmatmul.msk.f32.vlgmr.msra.gmra.mxu3 %vm4525_vm7, %v2949_v19  ;;  %vm4536_vm10 = vmmov %vm4525_vm7  ;;  %v2946_v35 = vsel %vm2356_vm12, 1.0, %v3093_v16  ;;  %v699_v23 = vpop.f32.mrf.mxu2  ;;  %v2337_v46 = vpop.permute.xlu0 %2336 }
 0x144   : > { %vm4537_vm8 = vmmov %vm4533_vm5  ;;  %v700_v49 = vadd.f32 %v699_v23, %v512_v55  ;;  %v659_v17 = vpop.f32.mrf.mxu0 }
 0x145   : > { %2964 = vmatpush.msk.msrb.mxu3 %vm4537_vm8, %v2382_v5  ;;  %vm4538_vm1 = vmmov %vm4521_vm3  ;;  %v660_v38 = vadd.f32 %v659_v17, %v472_v57  ;;  %v719_v37 = vpop.f32.mrf.mxu3 }
 0x146   : > { %2963 = vmatmul.msk.f32.vlgmr.msrb.gmra.mxu2 %vm4536_vm10, %v2949_v19  ;;  %v2344_v32 = vsel %vm4538_vm1, %v2337_v46, %v2339_v12  ;;  %vm4539_vm14 = vmmov %vm4538_vm1  ;;  %v679_v33 = vpop.f32.mrf.mxu1  ;;  %v720_v56 = vadd.f32 %v719_v37, %v532_v10 }
 0x147   : > { %v2345_v0 = vsel %vm4539_vm14, %v2335_v18, %v2337_v46  ;;  %v2380_v14 = vmul.f32 %v2946_v35, %v2344_v32  ;;  %v680_v34 = vadd.f32 %v679_v33, %v4135_v44  ;;  %vm4540_vm11 = vmmov %vm4533_vm5 }
 0x148   : > { %v2379_v39 = vmul.f32 %v2945_v13, %v2345_v0  ;;  %vm4541_vm4 = vmmov %vm4533_vm5 }
 0x149   : > { %2960 = vmatpush.msk.msrb.mxu1 %vm4541_vm4, %v2380_v14  ;;  %vm4542_vm6 = vmmov %vm4525_vm7 }
 0x14a   : > { %2958 = vmatpush.msk.msrb.mxu0 %vm4540_vm11, %v2379_v39  ;;  %vm4543_vm3 = vmmov %vm4542_vm6 }
 0x14b   : > { %2959 = vmatmul.msk.f32.vlgmr.msrb.gmra.mxu0 %vm4542_vm6, %v2949_v19  ;;  %2961 = vmatmul.msk.f32.vlgmr.msrb.gmra.mxu1 %vm4543_vm3, %v2949_v19  ;;  %vm4544_vm0 = vmmov %vm4543_vm3 }
 0x14c   : > { %2965 = vmatmul.msk.f32.vlgmr.msrb.gmra.mxu3 %vm4544_vm0, %v2949_v19 }
 0x14d   : > { %v896_v61 = vpop.f32.mrf.mxu2  ;;  %v856_v9 = vpop.f32.mrf.mxu0 }
 0x14e   : > { %v1001_v16 = vadd.f32 %v896_v61, %v620_v28  ;;  %v999_v31 = vadd.f32 %v856_v9, %v580_v8 }
 0x150   : > { %v876_v43 = vpop.f32.mrf.mxu1 }
 0x151   : > { %v1000_v59 = vadd.f32 %v876_v43, %v600_v26 }
 0x157   : > { %v916_v58 = vpop.f32.mrf.mxu3  ;;  %v936_v41 = vpop.f32.mrf.mxu0 }
 0x158   : > { %v1002_v36 = vadd.f32 %v916_v58, %v640_v52  ;;  %v1003_v29 = vadd.f32 %v936_v41, %v660_v38  ;;  %v956_v27 = vpop.f32.mrf.mxu1 }
 0x159   : > { %v1004_v15 = vadd.f32 %v956_v27, %v680_v34 }
 0x15f   : > { %v976_v40 = vpop.f32.mrf.mxu2 }
 0x160   : > { %v1005_v7 = vadd.f32 %v976_v40, %v700_v49  ;;  %v996_v47 = vpop.f32.mrf.mxu3  ;;  %v1145_v44 = vpop.f32.mrf.mxu1 }
 0x161   : > { %v1006_v30 = vadd.f32 %v996_v47, %v720_v56  ;;  %v1269_v55 = vadd.f32 %v1145_v44, %v1000_v59 }
 0x164   : > { %v1125_v57 = vpop.f32.mrf.mxu0 }
 0x165   : > { %v1268_v48 = vadd.f32 %v1125_v57, %v999_v31 }
 0x167   : > { %v1165_v4 = vpop.f32.mrf.mxu2 }
 0x168   : > { %v1270_v22 = vadd.f32 %v1165_v4, %v1001_v16 }
 0x16a   : > { %v1185_v3 = vpop.f32.mrf.mxu3 }
 0x16b   : > { %v1271_v54 = vadd.f32 %v1185_v3, %v1002_v36 }
 0x16d   : > { %v1205_v53 = vpop.f32.mrf.mxu0  ;;  %v1225_v11 = vpop.f32.mrf.mxu1 }
 0x16e   : > { %v1272_v1 = vadd.f32 %v1205_v53, %v1003_v29  ;;  %v1273_v19 = vadd.f32 %v1225_v11, %v1004_v15 }
 0x174   : > { %v1245_v10 = vpop.f32.mrf.mxu2  ;;  %v1265_v20 = vpop.f32.mrf.mxu3 }
 0x175   : > { %v1274_v26 = vadd.f32 %v1245_v10, %v1005_v7  ;;  %v4204_v51 = vadd.f32 %v1265_v20, %v1006_v30  ;;  %v1329_v2 = vpop.f32.mrf.mxu0  ;;  %v1349_v25 = vpop.f32.mrf.mxu1 }
 0x176   : > { %v1472_v56 = vadd.f32 %v1329_v2, %v1268_v48  ;;  %v1473_v61 = vadd.f32 %v1349_v25, %v1269_v55 }
 0x17c   : > { %v1369_v42 = vpop.f32.mrf.mxu2  ;;  %v1389_v28 = vpop.f32.mrf.mxu3 }
 0x17d   : > { %v1409_v18 = vpop.f32.mrf.mxu0  ;;  %v1429_v12 = vpop.f32.mrf.mxu1  ;;  %v1474_v16 = vadd.f32 %v1369_v42, %v1270_v22  ;;  %v1475_v27 = vadd.f32 %v1389_v28, %v1271_v54 }
 0x17e   : > { %v1476_v47 = vadd.f32 %v1409_v18, %v1272_v1  ;;  %v1477_v55 = vadd.f32 %v1429_v12, %v1273_v19 }
 0x184   : > { %v1449_v62 = vpop.f32.mrf.mxu2  ;;  %v1469_v24 = vpop.f32.mrf.mxu3 }
 0x185   : > { %v1598_v60 = vpop.f32.mrf.mxu0  ;;  %v1618_v63 = vpop.f32.mrf.mxu1  ;;  %v1478_v11 = vadd.f32 %v1449_v62, %v1274_v26  ;;  %v1479_v18 = vadd.f32 %v1469_v24, %v4204_v51 }
 0x186   : > { %v1741_v9 = vadd.f32 %v1598_v60, %v1472_v56  ;;  %v1742_v31 = vadd.f32 %v1618_v63, %v1473_v61 }
 0x18c   : > { %v1638_v50 = vpop.f32.mrf.mxu2 }
 0x18d   : > { %v1658_v21 = vpop.f32.mrf.mxu3  ;;  %v1743_v43 = vadd.f32 %v1638_v50, %v1474_v16 }
 0x18e   : > { %v1678_v6 = vpop.f32.mrf.mxu0  ;;  %v1744_v44 = vadd.f32 %v1658_v21, %v1475_v27 }
 0x18f   : > { %v1745_v22 = vadd.f32 %v1678_v6, %v1476_v47 }
 0x190   : > { %v1698_v8 = vpop.f32.mrf.mxu1 }
 0x191   : > { %v1746_v10 = vadd.f32 %v1698_v8, %v1477_v55 }
 0x197   : > { %v1718_v45 = vpop.f32.mrf.mxu2 }
 0x198   : > { %v1738_v52 = vpop.f32.mrf.mxu3  ;;  %v1747_v42 = vadd.f32 %v1718_v45, %v1478_v11 }
 0x199   : > { %v1883_v5 = vpop.f32.mrf.mxu0 }
 0x19a   : > { %v1903_v13 = vpop.f32.mrf.mxu1  ;;  %v2026_v59 = vadd.f32 %v1883_v5, %v1741_v9 }
 0x19b   : > { %v2027_v58 = vadd.f32 %v1903_v13, %v1742_v31  ;;  %v1748_v13 = vadd.f32 %v1738_v52, %v1479_v18 }
 0x1a1   : > { %v1923_v35 = vpop.f32.mrf.mxu2  ;;  %v1963_v46 = vpop.f32.mrf.mxu0 }
 0x1a2   : > { %v1943_v23 = vpop.f32.mrf.mxu3  ;;  %v1983_v49 = vpop.f32.mrf.mxu1  ;;  %v2028_v15 = vadd.f32 %v1923_v35, %v1743_v43  ;;  %v2030_v20 = vadd.f32 %v1963_v46, %v1745_v22 }
 0x1a3   : > { %v2029_v3 = vadd.f32 %v1943_v23, %v1744_v44  ;;  %v2031_v28 = vadd.f32 %v1983_v49, %v1746_v10 }
 0x1a9   : > { %v2003_v32 = vpop.f32.mrf.mxu2  ;;  %v2152_v17 = vpop.f32.mrf.mxu0 }
 0x1aa   : > { %v2023_v0 = vpop.f32.mrf.mxu3  ;;  %v2172_v39 = vpop.f32.mrf.mxu1  ;;  %v2295_v40 = vadd.f32 %v2152_v17, %v2026_v59  ;;  %v2032_v5 = vadd.f32 %v2003_v32, %v1747_v42 }
 0x1ab   : > { %v2296_v7 = vadd.f32 %v2172_v39, %v2027_v58  ;;  %v2033_v23 = vadd.f32 %v2023_v0, %v1748_v13 }
 0x1b1   : > { %v2192_v14 = vpop.f32.mrf.mxu2  ;;  %v2232_v33 = vpop.f32.mrf.mxu0 }
 0x1b2   : > { %v2212_v38 = vpop.f32.mrf.mxu3  ;;  %v2252_v37 = vpop.f32.mrf.mxu1  ;;  %v2297_v4 = vadd.f32 %v2192_v14, %v2028_v15  ;;  %v2299_v60 = vadd.f32 %v2232_v33, %v2030_v20 }
 0x1b3   : > { %v2298_v2 = vadd.f32 %v2212_v38, %v2029_v3  ;;  %v2300_v19 = vadd.f32 %v2252_v37, %v2031_v28 }
 0x1b9   : > { %v2272_v34 = vpop.f32.mrf.mxu2  ;;  %v2429_v41 = vpop.f32.mrf.mxu0 }
 0x1ba   : > { %v2292_v36 = vpop.f32.mrf.mxu3  ;;  %v2449_v29 = vpop.f32.mrf.mxu1  ;;  %v2572_v57 = vadd.f32 %v2429_v41, %v2295_v40  ;;  %v2301_v62 = vadd.f32 %v2272_v34, %v2032_v5 }
 0x1bb   : > { %v2573_v48 = vadd.f32 %v2449_v29, %v2296_v7  ;;  %v2302_v49 = vadd.f32 %v2292_v36, %v2033_v23 }
 0x1bd   : > { %v2580_v25 = vadd.f32 %v2573_v48, %v2572_v57 }
 0x1c1   : > { %v2469_v30 = vpop.f32.mrf.mxu2 }
 0x1c2   : > { %v2574_v53 = vadd.f32 %v2469_v30, %v2297_v4 }
 0x1c4   : > { %v2581_v63 = vadd.f32 %v2580_v25, %v2574_v53 }
 0x1c6   : > { %v2489_v54 = vpop.f32.mrf.mxu3 }
 0x1c7   : > { %v2575_v1 = vadd.f32 %v2489_v54, %v2298_v2 }
 0x1c8   : > { %v2509_v50 = vpop.f32.mrf.mxu0  ;;  %v2529_v21 = vpop.f32.mrf.mxu1 }
 0x1c9   : > { %v2582_v12 = vadd.f32 %v2581_v63, %v2575_v1  ;;  %v2576_v6 = vadd.f32 %v2509_v50, %v2299_v60  ;;  %v2549_v26 = vpop.f32.mrf.mxu2  ;;  %v2577_v35 = vadd.f32 %v2529_v21, %v2300_v19 }
 0x1ca   : > { %v2578_v45 = vadd.f32 %v2549_v26, %v2301_v62 }
 0x1cb   : > { %v2583_v8 = vadd.f32 %v2582_v12, %v2576_v6 }
 0x1cd   : > { %v2584_v46 = vadd.f32 %v2583_v8, %v2577_v35 }
 0x1cf   : > { %v2569_v17 = vpop.f32.mrf.mxu3  ;;  %v2585_v39 = vadd.f32 %v2584_v46, %v2578_v45 }
 0x1d0   : > { %v2579_v14 = vadd.f32 %v2569_v17, %v2302_v49 }
 0x1d2   : > { %v2586_v38 = vadd.f32 %v2585_v39, %v2579_v14 }
 0x1d4   : > { %2587 = vadd.xlane.f32.xlu1 %v2586_v38 }
 0x247   : > { %v2588_v51 = vpop.xlane.xlu1 %2587 }
 0x248   : > { %v2589_v24 = vmul.f32 0.0009765625, %v2588_v51 }
 0x24a   : > { %v2590_v32 = vsub.f32 %v2572_v57, %v2589_v24  ;;  %v2591_v33 = vsub.f32 %v2573_v48, %v2589_v24  ;;  %v2592_v37 = vsub.f32 %v2574_v53, %v2589_v24  ;;  %v2593_v56 = vsub.f32 %v2575_v1, %v2589_v24 }
 0x24b   : > { %v2594_v34 = vsub.f32 %v2576_v6, %v2589_v24  ;;  %v2595_v0 = vsub.f32 %v2577_v35, %v2589_v24  ;;  %v2596_v59 = vsub.f32 %v2578_v45, %v2589_v24  ;;  %v2597_v41 = vsub.f32 %v2579_v14, %v2589_v24 }
 0x24c   : > { %v2598_v52 = vmul.f32 %v2590_v32, %v2590_v32  ;;  %v2599_v61 = vmul.f32 %v2591_v33, %v2591_v33  ;;  %v2600_v16 = vmul.f32 %v2592_v37, %v2592_v37  ;;  %v2601_v31 = vmul.f32 %v2593_v56, %v2593_v56 }
 0x24d   : > { %v2602_v58 = vmul.f32 %v2594_v34, %v2594_v34  ;;  %v2603_v29 = vmul.f32 %v2595_v0, %v2595_v0  ;;  %v2604_v15 = vmul.f32 %v2596_v59, %v2596_v59  ;;  %v2605_v7 = vmul.f32 %v2597_v41, %v2597_v41 }
 0x24e   : > { %v2606_v9 = vadd.f32 %v2599_v61, %v2598_v52 }
 0x250   : > { %v2607_v43 = vadd.f32 %v2606_v9, %v2600_v16 }
 0x252   : > { %v2608_v36 = vadd.f32 %v2607_v43, %v2601_v31 }
 0x254   : > { %v2609_v27 = vadd.f32 %v2608_v36, %v2602_v58 }
 0x256   : > { %v2610_v40 = vadd.f32 %v2609_v27, %v2603_v29 }
 0x258   : > { %v2611_v47 = vadd.f32 %v2610_v40, %v2604_v15 }
 0x25a   : > { %v2612_v30 = vadd.f32 %v2611_v47, %v2605_v7 }
 0x25c   : > { %2613 = vadd.xlane.f32.xlu2 %v2612_v30 }
 0x2cf   : > { %v2614_v44 = vpop.xlane.xlu2 %2613 }
 0x2d0   : > { %v2615_v4 = vmul.f32 0.0009765625, %v2614_v44 }
 0x2d2   : > { %v2616_v57 = vadd.f32 1e-05, %v2615_v4 }
 0x2d4   : > { %3021 = vrsqrt.f32 %v2616_v57  ;;  %vm2623_vm13 = vweird.f32 %v2616_v57 }
 0x2da   : > { %v3022_v48 = vpop.eup %3021 }
 0x2db   : > { %v2618_v55 = vmul.f32 %v3022_v48, %v2616_v57  ;;  %vm2624_vm15 = vweird.f32 %v3022_v48 }
 0x2dc   : > { %vm2625_vm5 = vmor %vm2623_vm13, %vm2624_vm15 }
 0x2dd   : > { %v2619_v22 = vmul.f32 %v3022_v48, %v2618_v55 }
 0x2df   : > { %v2620_v3 = vmul.f32 0.5, %v2619_v22 }
 0x2e1   : > { %v2621_v53 = vsub.f32 1.5, %v2620_v3 }
 0x2e3   : > { %v2622_v11 = vmul.f32 %v3022_v48, %v2621_v53 }
 0x2e5   : > { %v2626_v10 = vsel %vm2625_vm5, %v3022_v48, %v2622_v11 }
 0x2e6   : > { %v2627_v20 = vmul.f32 %v2626_v10, %v2590_v32  ;;  %v2628_v2 = vmul.f32 %v2626_v10, %v2591_v33  ;;  %v2629_v25 = vmul.f32 %v2626_v10, %v2592_v37  ;;  %v2630_v42 = vmul.f32 %v2626_v10, %v2593_v56 }
 0x2e7   : > { %v2631_v54 = vmul.f32 %v2626_v10, %v2594_v34  ;;  %v2632_v28 = vmul.f32 %v2626_v10, %v2595_v0  ;;  %v2633_v60 = vmul.f32 %v2626_v10, %v2596_v59  ;;  %v2634_v63 = vmul.f32 %v2626_v10, %v2597_v41 }
 0x2e8   : > { %vm2635_vm2 = vcmp.gt.f32.partialorder %v2627_v20, 0.0  ;;  %vm2636_vm9 = vcmp.gt.f32.partialorder %v2628_v2, 0.0  ;;  %vm2637_vm12 = vcmp.gt.f32.partialorder %v2629_v25, 0.0  ;;  %vm2638_vm7 = vcmp.gt.f32.partialorder %v2630_v42, 0.0 }
 0x2e9   : > { %vm2639_vm10 = vcmp.gt.f32.partialorder %v2631_v54, 0.0  ;;  %v2643_v1 = vmul.f32 0.2, %v2627_v20  ;;  %v2644_v18 = vmul.f32 0.2, %v2628_v2  ;;  %vm2640_vm8 = vcmp.gt.f32.partialorder %v2632_v28, 0.0 }
 0x2ea   : > { %v2645_v50 = vmul.f32 0.2, %v2629_v25  ;;  %v2646_v21 = vmul.f32 0.2, %v2630_v42  ;;  %v2647_v5 = vmul.f32 0.2, %v2631_v54 }
 0x2eb   : > { %v2648_v19 = vmul.f32 0.2, %v2632_v28  ;;  %v2649_v12 = vmul.f32 0.2, %v2633_v60  ;;  %v2651_v6 = vsel %vm2635_vm2, %v2627_v20, %v2643_v1  ;;  %v2652_v13 = vsel %vm2636_vm9, %v2628_v2, %v2644_v18 }
 0x2ec   : > { %vm2641_vm1 = vcmp.gt.f32.partialorder %v2633_v60, 0.0  ;;  %v2650_v26 = vmul.f32 0.2, %v2634_v63  ;;  %v2653_v62 = vsel %vm2637_vm12, %v2629_v25, %v2645_v50  ;;  %v2654_v8 = vsel %vm2638_vm7, %v2630_v42, %v2646_v21  ;;  %2659 = vst [vmem:[%s136_s13] sm:$0xff] %v2651_v6 }
 0x2ed   : > { %vm2642_vm14 = vcmp.gt.f32.partialorder %v2634_v63, 0.0  ;;  %v2655_v35 = vsel %vm2639_vm10, %v2631_v54, %v2647_v5  ;;  %2660 = vst [vmem:[%s136_s13 + $0x8] sm:$0xff] %v2652_v13  ;;  %v2656_v23 = vsel %vm2640_vm8, %v2632_v28, %v2648_v19  ;;  %v2657_v45 = vsel %vm2641_vm1, %v2633_v60, %v2649_v12 }
 0x2ee   : > { %2661 = vst [vmem:[%s136_s13 + $0x10] sm:$0xff] %v2653_v62  ;;  %v2658_v46 = vsel %vm2642_vm14, %v2634_v63, %v2650_v26 }
 0x2ef   : > { %2662 = vst [vmem:[%s136_s13 + $0x18] sm:$0xff] %v2654_v8 }
 0x2f0   : > { %2663 = vst [vmem:[%s136_s13 + $0x20] sm:$0xff] %v2655_v35 }
 0x2f1   : > { %2664 = vst [vmem:[%s136_s13 + $0x28] sm:$0xff] %v2656_v23 }
 0x2f2   : > { %2665 = vst [vmem:[%s136_s13 + $0x30] sm:$0xff] %v2657_v45 }
 0x2f3   : > { %2666 = vst [vmem:[%s136_s13 + $0x38] sm:$0xff] %v2658_v46 }
 0x2f4   : > { %3050 = shalt.err (!%p3047_p3)
}
 0x2f5   : > { %2973 = dma.vmem_to_hbm [thread:$0]  (%p3149_p5), %s2682_s17, 1024, %s2684_s21, %s2668_s22  }
 0x2f6 PF: > { %p2979_p4 = scmp.ge.s32.totalorder %s3085_s12, 2  ;;  %s2695_s30 = sand.u32 1, %s3073_s9  }
 0x2f7   : > { %s2696_s3 = scalar_lea.sflag [#allocation3], %s2695_s30 }
 0x2f8   : > { %p2976_p7 = pnand %p2979_p4, %p3153_p6 }
 0x2fa   : > { %p2977_p8 = pneg %p2976_p7 }
 0x2fc   : > { %3068 = dma.done.wait (%p2977_p8), %s2696_s3, 1024  }
 0x2fd   : > { %3070 = vsyncadd (%p2977_p8), %s2696_s3, 4294966272  ;;  %p12_p9 = scmp.ge.s32.totalorder %s3136_s15, 4   ;;  %s4545_s9 = smov %s3077_s10 }
 0x2fe   : > { %s4546_s10 = smov %s3081_s11  ;;  %s4547_s11 = smov %s3147_s18 }
 0x2ff   : > { %s4548_s12 = smov %s3136_s15  ;;  %14 = sbr.rel (!%p12_p9) target bundleno = 3 (0x3), region = 98 }
 0x304   :  { %2702 = vsyncpa [#allocation3], 1 }
 0x305   :  { %2704 = vsyncpa [#allocation3 + $0x1], 1 }

</bundles_post_ra>
